<compile_context>
chip_gen: v7x
topology: tpu7x:2x2x1
jax: 0.10.0
libtpu: 0.0.40
codegen_flags: <defaults>
</compile_context>

<pallas_src>
import numpy as np
import jax
import jax.numpy as jnp
from jax.experimental import pallas as pl
from jax.experimental.pallas import tpu as pltpu


NF = 410          # original feature width
NG = 16           # selector group count (10 used, padded to 16)

# (lo, hi) original-column ranges of the 10 reduction groups
_GROUPS = ((98, 206), (302, 410),            # p1, p2
           (2, 34), (34, 66), (66, 98),      # h1_r, h1_g, h1_b
           (206, 238), (238, 270), (270, 302),  # h2_r, h2_g, h2_b
           (2, 194), (194, 410))             # e[:, 2:194], e[:, 194:410]

# L (collapse operand) layout: [ h3 0:50 | G 50:96 | W1 96:142 | W2 142:188 ]
# G layout:  0:16 group means | 16:32 group variances | 32:40 (msd, ad_r, ad_g, ad_b, 0*4)
#            | 40:46 (max h1_r, h2_r, h1_g, h2_g, h1_b, h2_b)
L_DIM = 188
G_DIM = 46


def _build_selectors():
    m1 = np.zeros((NF, 2 * NG), np.float32)        # fused into the fc2 matmul
    m2 = np.zeros((NF, NG), np.float32)            # second moments
    for g, (lo, hi) in enumerate(_GROUPS):
        n = hi - lo
        m1[lo:hi, g] = 1.0 / n                     # -> mean
        m1[lo:hi, NG + g] = 1.0 / (n - 1)          # -> sum / (n-1)
        m2[lo:hi, g] = 1.0 / (n - 1)               # -> sum(x^2) / (n-1)
    # q = [|h1-h2| (96) | (p1-p2)^2 (108)]  ->  msd, ad_r, ad_g, ad_b
    m3 = np.zeros((204, 8), np.float32)
    m3[96:204, 0] = 1.0 / 108.0
    m3[0:32, 1] = 1.0 / 32.0
    m3[32:64, 2] = 1.0 / 32.0
    m3[64:96, 3] = 1.0 / 32.0
    return m1, m2, m3


def _build_threshold_consts():
    """(6, 46): rows = (sgn1, thr1, coef1, sgn2, thr2, coef2) over the G columns.
    indicator = (G * sgn > thr); the contribution 'coef' is summed by the collapse."""
    tc = np.zeros((6, G_DIM), np.float32)
    tc[1, :] = 1.0          # unused columns: 0 > 1 is always False
    tc[4, :] = 1.0

    def s1(col, sgn, thr, c):
        tc[0, col], tc[1, col], tc[2, col] = sgn, thr, c

    def s2(col, sgn, thr, c):
        tc[3, col], tc[4, col], tc[5, col] = sgn, thr, c

    for c in (0, 1):                 # mean_p1 / mean_p2 < 3/256     -> 30 each
        s1(c, -1.0, -3.0 / 256.0, 30.0)
    for c in (24, 25):               # var(e[2:194]) / var(e[194:]) < 0.01 -> 1 each
        s1(c, -1.0, -0.01, 1.0)
    s1(32, 1.0, 0.15, 0.3)           # msd > 0.15
    for c in (33, 34, 35):           # ad_* > 0.003                  -> 0.1 each
        s1(c, 1.0, 0.003, 0.1)
    for c in range(40, 46):          # max > 0.03                    -> 0.1 each
        s1(c, 1.0, 0.03, 0.1)

    for c in (0, 1):                 # mean_p1 / mean_p2 > 253/256   -> 30 each
        s2(c, 1.0, 253.0 / 256.0, 30.0)
    s2(32, -1.0, -0.0003, 0.3)       # msd < 0.0003
    for c in range(40, 46):          # max > 0.06                    -> 3 each
        s2(c, 1.0, 0.06, 3.0)
    return tc


_M1_NP, _M2_NP, _M3_NP = _build_selectors()
_TC_NP = _build_threshold_consts()


def _build_collapse(w4a, w4b):
    """[188, 2]: col 0 -> added to the embedding (fc4), col 1 -> artifact_inference."""
    base = np.zeros((L_DIM, 2), np.float32)
    base[50 + 18:50 + 24, 1] = 30.0      # 30 * six histogram variances
    base[50 + 33:50 + 36, 1] = 50.0      # 50 * (ad_r + ad_g + ad_b)
    base[96:188, 1] = 1.0                # thresholded-coefficient blocks pass through
    cm = jnp.asarray(base)
    cm = cm.at[0:50, 0].set(w4a[:, 0])   # fc4 weights for the fc3 output
    g_cols = np.array([0, 1, 16, 17, 32, 33, 34, 35, 40, 41, 42, 43, 44, 45]) + 50
    scales = jnp.asarray(np.array([0.1, 0.1, 5, 5, 1, 20, 20, 20,
                                   5, 5, 5, 5, 5, 5], np.float32))
    cm = cm.at[g_cols, 0].set(w4b * scales)   # fc4 weights * arti_embedding scales
    return cm


def _round_up(v, m):
    return ((v + m - 1) // m) * m


# ----------------------------------------------------------------------------
# Pallas kernel: one batch tile of the full forward pass (original 410-col layout)
# ----------------------------------------------------------------------------
def embedding_net_kernel(x_ref, rhs1_ref, m2_ref, m3_ref, w3_ref, b2_ref, b3_ref,
                         cm_ref, tc_ref, b4_ref, out_ref, l_ref):
    x = x_ref[...]                                                        # [TB, 410] f32

    # ---- fused fc2 + mean/sum selectors (one MXU pass) ----
    mm1 = jnp.dot(x, rhs1_ref[...], preferred_element_type=jnp.float32)   # [TB, 232]
    s1m = mm1[:, 200:216]                       # per-group means
    s1s = mm1[:, 216:232]                       # per-group sums / (n-1)
    s2 = jnp.dot(x * x, m2_ref[...], preferred_element_type=jnp.float32)  # [TB, 16]
    variances = s2 - s1m * s1s                  # unbiased (ddof=1), lane-packed

    # ---- pairwise diffs (single shifted slice pair), reduced on the MXU ----
    xa = x[:, 2:206]                            # [h1_r | h1_g | h1_b | p1]
    xb = x[:, 206:410]                          # [h2_r | h2_g | h2_b | p2]
    d = xa - xb
    col = jax.lax.broadcasted_iota(jnp.int32, (1, 204), 1)
    q = jnp.where(col < 96, jnp.abs(d), d * d)  # |h diffs| then (p1-p2)^2
    r = jnp.dot(q, m3_ref[...], preferred_element_type=jnp.float32)       # msd, ad_r/g/b

    # ---- MLP (embedding) ----
    h2 = jnp.maximum(mm1[:, 0:200] + b2_ref[...], 0.0)
    h3 = jnp.maximum(jnp.dot(h2, w3_ref[...], preferred_element_type=jnp.float32)
                     + b3_ref[...], 0.0)                                  # [TB, 50]

    # ---- assemble the lane-packed collapse operand L = [h3 | G | W1 | W2] ----
    l_ref[:, 0:50] = h3
    l_ref[:, 50:66] = s1m
    l_ref[:, 66:82] = variances
    l_ref[:, 82:90] = r
    l_ref[:, 90:91] = jnp.max(xa[:, 0:32], axis=1, keepdims=True)    # max h1_r
    l_ref[:, 91:92] = jnp.max(xb[:, 0:32], axis=1, keepdims=True)    # max h2_r
    l_ref[:, 92:93] = jnp.max(xa[:, 32:64], axis=1, keepdims=True)   # max h1_g
    l_ref[:, 93:94] = jnp.max(xb[:, 32:64], axis=1, keepdims=True)   # max h2_g
    l_ref[:, 94:95] = jnp.max(xa[:, 64:96], axis=1, keepdims=True)   # max h1_b
    l_ref[:, 95:96] = jnp.max(xb[:, 64:96], axis=1, keepdims=True)   # max h2_b

    g = l_ref[:, 50:96]                                              # [TB, 46] features
    tc = tc_ref[...]
    # thresholded artifact terms: each column contributes its coefficient when it fires
    l_ref[:, 96:142] = jnp.where(g * tc[0:1, :] > tc[1:2, :], tc[2:3, :], 0.0)
    l_ref[:, 142:188] = jnp.where(g * tc[3:4, :] > tc[4:5, :], tc[5:6, :], 0.0)

    # ---- one small matmul collapses everything to (embedding add-on, artifact) ----
    res = jnp.dot(l_ref[...], cm_ref[...], preferred_element_type=jnp.float32)  # [TB, 2]
    emb = res[:, 0:1] + b4_ref[0]
    artifact = res[:, 1:2]

    # forward(): w = exp(-0.5 * artifact_inference + 0.5 * embedding)
    # TODO(synk): a lane-dense (1, b_pad) output would need a [TB,1] transpose costing
    # more XLU than the masked stores it saves; kept as a (tb, 1) block.
    out_ref[...] = jnp.exp(0.5 * emb - 0.5 * artifact)


# ----------------------------------------------------------------------------
# Wrapper: batch-tiled pallas_call on the original layout (no repacking copies)
# ----------------------------------------------------------------------------
def embedding_net_forward(e, params, *, tile_b=1024):
    w2, b2, w3, b3, w4a, w4b, b4 = params
    assert e.shape[1] == NF
    B = e.shape[0]

    e = e.astype(jnp.float32)
    rhs1 = jnp.concatenate([w2.astype(jnp.float32), jnp.asarray(_M1_NP)], axis=1)
    m2 = jnp.asarray(_M2_NP)
    m3 = jnp.asarray(_M3_NP)
    tc = jnp.asarray(_TC_NP)
    cm = _build_collapse(w4a.astype(jnp.float32), w4b.astype(jnp.float32))
    b2 = b2.astype(jnp.float32)
    w3 = w3.astype(jnp.float32)
    b3 = b3.astype(jnp.float32)
    b4 = b4.astype(jnp.float32)

    # tile selection: big tiles for pipelining, but >=4 grid steps for large batches so
    # the "parallel" axis can load-balance across v7x's two TensorCores.
    tb = int(min(tile_b, _round_up(B, 8)))
    if B >= 4 * 512:
        tb = int(min(tb, max(512, _round_up(-(-B // 4), 8))))
    tb = max(tb, 8)
    b_pad = _round_up(B, tb)
    if b_pad != B:                       # only wrapper-side copy; skipped when tb | B
        e = jnp.pad(e, ((0, b_pad - B), (0, 0)))
    grid = (b_pad // tb,)

    def const_spec(shape):
        return pl.BlockSpec(shape, lambda i: (0, 0))

    out = pl.pallas_call(
        embedding_net_kernel,
        out_shape=jax.ShapeDtypeStruct((b_pad, 1), jnp.float32),
        grid=grid,
        in_specs=[
            pl.BlockSpec((tb, NF), lambda i: (i, 0)),              # e (batch tiled)
            const_spec((NF, 232)),                                 # [W2 | M1]
            const_spec((NF, NG)),                                  # M2
            const_spec((204, 8)),                                  # M3
            const_spec((200, 50)),                                 # W3
            const_spec((1, 200)),                                  # b2
            const_spec((1, 50)),                                   # b3
            const_spec((L_DIM, 2)),                                # collapse matrix
            const_spec((6, G_DIM)),                                # threshold constants
            pl.BlockSpec(memory_space=pltpu.MemorySpace.SMEM),     # b4 (1,)
        ],
        out_specs=pl.BlockSpec((tb, 1), lambda i: (i, 0)),
        scratch_shapes=[pltpu.VMEM((tb, L_DIM), jnp.float32)],
        compiler_params=pltpu.CompilerParams(
            dimension_semantics=("parallel",)),
    )(e, rhs1, m2, m3, w3, b2, b3, cm, tc, b4)
    return out[:B]


# ----------------------------------------------------------------------------
# Deterministic parameter init (PyTorch Linear-style uniform bounds)
# ----------------------------------------------------------------------------
def init_params(key):
    def linear(key, fan_in, fan_out):
        kw, kb = jax.random.split(key)
        bound = 1.0 / np.sqrt(fan_in)
        w = jax.random.uniform(kw, (fan_in, fan_out), jnp.float32, -bound, bound)
        b = jax.random.uniform(kb, (1, fan_out), jnp.float32, -bound, bound)
        return w, b

    k2, k3, k4 = jax.random.split(key, 3)
    w2, b2 = linear(k2, 410, 200)
    w3, b3 = linear(k3, 200, 50)
    w4, b4 = linear(k4, 64, 1)             # fc4: in=64 (= 50 mlp + 14 arti), out=1
    w4a = w4[:50, :]                       # (50, 1) -> matmul with fc3 output
    w4b = w4[50:, 0]                       # (14,)   -> weights for the arti features
    b4 = b4[0]                             # (1,)
    return w2, b2, w3, b3, w4a, w4b, b4


# ----------------------------------------------------------------------------
# Pure-JAX reference (same math, original layout)
# ----------------------------------------------------------------------------
def reference_forward(e, params):
    w2, b2, w3, b3, w4a, w4b, b4 = params
    p1, p2 = e[:, 98:206], e[:, 302:410]
    h1_r, h2_r = e[:, 2:34], e[:, 206:238]
    h1_g, h2_g = e[:, 34:66], e[:, 238:270]
    h1_b, h2_b = e[:, 66:98], e[:, 270:302]

    mean_p1 = jnp.mean(p1, 1, keepdims=True); mean_p2 = jnp.mean(p2, 1, keepdims=True)
    msd = jnp.mean((p1 - p2) ** 2, 1, keepdims=True)
    ad_r = jnp.mean(jnp.abs(h1_r - h2_r), 1, keepdims=True)
    ad_g = jnp.mean(jnp.abs(h1_g - h2_g), 1, keepdims=True)
    ad_b = jnp.mean(jnp.abs(h1_b - h2_b), 1, keepdims=True)
    mx = lambda x: jnp.max(x, 1, keepdims=True)
    var1 = lambda x: jnp.var(x, 1, ddof=1, keepdims=True)

    e_arti = jnp.concatenate([
        mean_p1 * 0.1, mean_p2 * 0.1, var1(p1) * 5.0, var1(p2) * 5.0, msd,
        ad_r * 20.0, ad_g * 20.0, ad_b * 20.0,
        mx(h1_r) * 5.0, mx(h2_r) * 5.0, mx(h1_g) * 5.0,
        mx(h2_g) * 5.0, mx(h1_b) * 5.0, mx(h2_b) * 5.0], axis=1)

    h2 = jax.nn.relu(e @ w2 + b2)
    h3 = jax.nn.relu(h2 @ w3 + b3)
    emb = h3 @ w4a + e_arti @ w4b[:, None] + b4[None, :]

    f = lambda b: b.astype(jnp.float32)
    e_a1 = 30.0 * (f(mean_p1 < 3 / 256) + f(mean_p2 < 3 / 256)
                   + f(mean_p1 > 253 / 256) + f(mean_p2 > 253 / 256))
    e_a2 = f(var1(e[:, 2:194]) < 0.01) + f(var1(e[:, 194:410]) < 0.01)
    e_a5 = 0.3 * (f(msd > 0.15) + f(msd < 0.0003))
    e_a6 = 50.0 * (ad_r + ad_g + ad_b)
    e_a6_1 = 0.1 * (f(ad_r > 0.003) + f(ad_g > 0.003) + f(ad_b > 0.003))
    e_a6_2 = 0.1 * sum(f(mx(h) > 0.03) for h in (h1_r, h2_r, h1_g, h2_g, h1_b, h2_b))
    e_a6_3 = 3.0 * sum(f(mx(h) > 0.06) for h in (h1_r, h2_r, h1_g, h2_g, h1_b, h2_b))
    e_a6_4 = 30.0 * sum(var1(h) for h in (h1_r, h1_g, h1_b, h2_r, h2_g, h2_b))
    artifact = e_a1 + e_a2 + e_a5 + e_a6 + e_a6_1 + e_a6_2 + e_a6_3 + e_a6_4
    return jnp.exp(-0.5 * artifact + 0.5 * emb)


if __name__ == "__main__":
    key = jax.random.PRNGKey(0)
    k_in, k_p, k_big = jax.random.split(key, 3)
    params = init_params(k_p)

    # ---- small-shape correctness check (single tile, padded 4 -> 8 rows) ----
    B = 4
    e = jax.random.uniform(k_in, (B, 410), jnp.float32, 0.0, 1.0)
    out = jax.block_until_ready(embedding_net_forward(e, params))
    ref = reference_forward(e, params)
    np.testing.assert_allclose(np.asarray(out), np.asarray(ref), rtol=1e-3, atol=0.0)

    # ---- multi-tile grid + batch-padding check ----
    Bb = 1000
    eb = jax.random.uniform(k_big, (Bb, 410), jnp.float32, 0.0, 1.0)
    outb = np.asarray(jax.block_until_ready(
        embedding_net_forward(eb, params, tile_b=256)))
    refb = np.asarray(reference_forward(eb, params))
    assert outb.shape == (Bb, 1) and np.all(np.isfinite(outb))
    rel = np.abs(outb - refb) / (np.abs(refb) + 1e-30)
    # the module's hard thresholds are discontinuous: tolerate the (rare) row sitting
    # numerically on a threshold, require the bulk to match tightly.
    assert np.median(rel) < 1e-3 and np.mean(rel < 1e-2) >= 0.999

    print("KERNEL_OK")
</pallas_src>

<mosaic_0001>
module attributes {stable_mosaic.version = 11 : i64} {
  func.func @embedding_net_kernel(%arg0: i32, %arg1: memref<8x410xf32, #tpu.memory_space<vmem>>, %arg2: memref<410x232xf32, #tpu.memory_space<vmem>>, %arg3: memref<410x16xf32, #tpu.memory_space<vmem>>, %arg4: memref<204x8xf32, #tpu.memory_space<vmem>>, %arg5: memref<200x50xf32, #tpu.memory_space<vmem>>, %arg6: memref<1x200xf32, #tpu.memory_space<vmem>>, %arg7: memref<1x50xf32, #tpu.memory_space<vmem>>, %arg8: memref<188x2xf32, #tpu.memory_space<vmem>>, %arg9: memref<6x46xf32, #tpu.memory_space<vmem>>, %arg10: memref<1xf32, #tpu.memory_space<smem>>, %arg11: memref<8x1xf32, #tpu.memory_space<vmem>>, %arg12: memref<8x188xf32, #tpu.memory_space<vmem>>) attributes {dimension_semantics = [#tpu.dimension_semantics<parallel>], iteration_bounds = array<i64: 1>, scalar_prefetch = 0 : i64, scratch_operands = 1 : i64, tpu.core_type = #tpu.core_type<tc>, window_params = [{transform_indices = @transform_0, window_bounds = array<i64: 8, 410>}, {pipeline_mode = #tpu.pipeline_mode<synchronous>, transform_indices = @transform_1, window_bounds = array<i64: 410, 232>}, {pipeline_mode = #tpu.pipeline_mode<synchronous>, transform_indices = @transform_2, window_bounds = array<i64: 410, 16>}, {pipeline_mode = #tpu.pipeline_mode<synchronous>, transform_indices = @transform_3, window_bounds = array<i64: 204, 8>}, {pipeline_mode = #tpu.pipeline_mode<synchronous>, transform_indices = @transform_4, window_bounds = array<i64: 200, 50>}, {pipeline_mode = #tpu.pipeline_mode<synchronous>, transform_indices = @transform_5, window_bounds = array<i64: 1, 200>}, {pipeline_mode = #tpu.pipeline_mode<synchronous>, transform_indices = @transform_6, window_bounds = array<i64: 1, 50>}, {pipeline_mode = #tpu.pipeline_mode<synchronous>, transform_indices = @transform_7, window_bounds = array<i64: 188, 2>}, {pipeline_mode = #tpu.pipeline_mode<synchronous>, transform_indices = @transform_8, window_bounds = array<i64: 6, 46>}, {transform_indices = @transform_9, window_bounds = array<i64: 1>}, {transform_indices = @transform_10, window_bounds = array<i64: 8, 1>}]} {
    %c0 = arith.constant 0 : index
    %c0_0 = arith.constant 0 : index
    %0 = vector.load %arg1[%c0, %c0_0] : memref<8x410xf32, #tpu.memory_space<vmem>>, vector<8x410xf32>
    %c0_1 = arith.constant 0 : index
    %c0_2 = arith.constant 0 : index
    %1 = vector.load %arg2[%c0_1, %c0_2] : memref<410x232xf32, #tpu.memory_space<vmem>>, vector<410x232xf32>
    %cst = arith.constant dense<0.000000e+00> : vector<8x232xf32>
    %2 = tpu.matmul %0, %1, %cst {dimension_numbers = #tpu.dot_dimension_numbers<[1], [0], [0], [1], [0, 0, 1, 1], [], []>} : vector<8x410xf32>, vector<410x232xf32>, vector<8x232xf32> -> vector<8x232xf32>
    %3 = vector.extract_strided_slice %2 {offsets = [0, 200], sizes = [8, 16], strides = [1, 1]} : vector<8x232xf32> to vector<8x16xf32>
    %4 = vector.extract_strided_slice %2 {offsets = [0, 216], sizes = [8, 16], strides = [1, 1]} : vector<8x232xf32> to vector<8x16xf32>
    %5 = arith.mulf %0, %0 : vector<8x410xf32>
    %c0_3 = arith.constant 0 : index
    %c0_4 = arith.constant 0 : index
    %6 = vector.load %arg3[%c0_3, %c0_4] : memref<410x16xf32, #tpu.memory_space<vmem>>, vector<410x16xf32>
    %cst_5 = arith.constant dense<0.000000e+00> : vector<8x16xf32>
    %7 = tpu.matmul %5, %6, %cst_5 {dimension_numbers = #tpu.dot_dimension_numbers<[1], [0], [0], [1], [0, 0, 1, 1], [], []>} : vector<8x410xf32>, vector<410x16xf32>, vector<8x16xf32> -> vector<8x16xf32>
    %8 = arith.mulf %3, %4 : vector<8x16xf32>
    %9 = arith.subf %7, %8 : vector<8x16xf32>
    %10 = vector.extract_strided_slice %0 {offsets = [0, 2], sizes = [8, 204], strides = [1, 1]} : vector<8x410xf32> to vector<8x204xf32>
    %11 = vector.extract_strided_slice %0 {offsets = [0, 206], sizes = [8, 204], strides = [1, 1]} : vector<8x410xf32> to vector<8x204xf32>
    %12 = arith.subf %10, %11 : vector<8x204xf32>
    %13 = tpu.iota {dimensions = array<i32: 1>} : vector<1x204xi32>
    %c96_i32 = arith.constant 96 : i32
    %14 = vector.broadcast %c96_i32 : i32 to vector<1x204xi32>
    %15 = arith.cmpi slt, %13, %14 : vector<1x204xi32>
    %16 = math.absf %12 : vector<8x204xf32>
    %17 = arith.mulf %12, %12 : vector<8x204xf32>
    %18 = vector.shape_cast %15 : vector<1x204xi1> to vector<1x204xi1>
    %19 = vector.broadcast %18 : vector<1x204xi1> to vector<8x204xi1>
    %20 = arith.select %19, %16, %17 : vector<8x204xi1>, vector<8x204xf32>
    %c0_6 = arith.constant 0 : index
    %c0_7 = arith.constant 0 : index
    %21 = vector.load %arg4[%c0_6, %c0_7] : memref<204x8xf32, #tpu.memory_space<vmem>>, vector<204x8xf32>
    %cst_8 = arith.constant dense<0.000000e+00> : vector<8x8xf32>
    %22 = tpu.matmul %20, %21, %cst_8 {dimension_numbers = #tpu.dot_dimension_numbers<[1], [0], [0], [1], [0, 0, 1, 1], [], []>} : vector<8x204xf32>, vector<204x8xf32>, vector<8x8xf32> -> vector<8x8xf32>
    %23 = vector.extract_strided_slice %2 {offsets = [0, 0], sizes = [8, 200], strides = [1, 1]} : vector<8x232xf32> to vector<8x200xf32>
    %c0_9 = arith.constant 0 : index
    %c0_10 = arith.constant 0 : index
    %24 = vector.load %arg6[%c0_9, %c0_10] : memref<1x200xf32, #tpu.memory_space<vmem>>, vector<1x200xf32>
    %25 = vector.broadcast %24 : vector<1x200xf32> to vector<8x200xf32>
    %26 = arith.addf %23, %25 : vector<8x200xf32>
    %cst_11 = arith.constant 0.000000e+00 : f32
    %27 = vector.broadcast %cst_11 : f32 to vector<8x200xf32>
    %28 = arith.maximumf %26, %27 : vector<8x200xf32>
    %c0_12 = arith.constant 0 : index
    %c0_13 = arith.constant 0 : index
    %29 = vector.load %arg5[%c0_12, %c0_13] : memref<200x50xf32, #tpu.memory_space<vmem>>, vector<200x50xf32>
    %cst_14 = arith.constant dense<0.000000e+00> : vector<8x50xf32>
    %30 = tpu.matmul %28, %29, %cst_14 {dimension_numbers = #tpu.dot_dimension_numbers<[1], [0], [0], [1], [0, 0, 1, 1], [], []>} : vector<8x200xf32>, vector<200x50xf32>, vector<8x50xf32> -> vector<8x50xf32>
    %c0_15 = arith.constant 0 : index
    %c0_16 = arith.constant 0 : index
    %31 = vector.load %arg7[%c0_15, %c0_16] : memref<1x50xf32, #tpu.memory_space<vmem>>, vector<1x50xf32>
    %32 = vector.broadcast %31 : vector<1x50xf32> to vector<8x50xf32>
    %33 = arith.addf %30, %32 : vector<8x50xf32>
    %cst_17 = arith.constant 0.000000e+00 : f32
    %34 = vector.broadcast %cst_17 : f32 to vector<8x50xf32>
    %35 = arith.maximumf %33, %34 : vector<8x50xf32>
    %c0_18 = arith.constant 0 : index
    %c0_19 = arith.constant 0 : index
    %36 = vector.load %arg12[%c0_18, %c0_19] : memref<8x188xf32, #tpu.memory_space<vmem>>, vector<8x50xf32>
    tpu.vector_store %arg12[%c0_18, %c0_19], %35 {strides = array<i32>} : memref<8x188xf32, #tpu.memory_space<vmem>>, vector<8x50xf32>,
    %c0_20 = arith.constant 0 : index
    %c50 = arith.constant 50 : index
    %37 = vector.load %arg12[%c0_20, %c50] : memref<8x188xf32, #tpu.memory_space<vmem>>, vector<8x16xf32>
    tpu.vector_store %arg12[%c0_20, %c50], %3 {strides = array<i32>} : memref<8x188xf32, #tpu.memory_space<vmem>>, vector<8x16xf32>,
    %c0_21 = arith.constant 0 : index
    %c66 = arith.constant 66 : index
    %38 = vector.load %arg12[%c0_21, %c66] : memref<8x188xf32, #tpu.memory_space<vmem>>, vector<8x16xf32>
    tpu.vector_store %arg12[%c0_21, %c66], %9 {strides = array<i32>} : memref<8x188xf32, #tpu.memory_space<vmem>>, vector<8x16xf32>,
    %c0_22 = arith.constant 0 : index
    %c82 = arith.constant 82 : index
    %39 = vector.load %arg12[%c0_22, %c82] : memref<8x188xf32, #tpu.memory_space<vmem>>, vector<8x8xf32>
    tpu.vector_store %arg12[%c0_22, %c82], %22 {strides = array<i32>} : memref<8x188xf32, #tpu.memory_space<vmem>>, vector<8x8xf32>,
    %40 = vector.extract_strided_slice %10 {offsets = [0, 0], sizes = [8, 32], strides = [1, 1]} : vector<8x204xf32> to vector<8x32xf32>
    %cst_23 = arith.constant dense<0xFF800000> : vector<8xf32>
    %41 = vector.multi_reduction <maximumf>, %40, %cst_23 [1] : vector<8x32xf32> to vector<8xf32>
    %42 = vector.shape_cast %41 : vector<8xf32> to vector<8x1xf32>
    %c0_24 = arith.constant 0 : index
    %c90 = arith.constant 90 : index
    %43 = vector.load %arg12[%c0_24, %c90] : memref<8x188xf32, #tpu.memory_space<vmem>>, vector<8x1xf32>
    tpu.vector_store %arg12[%c0_24, %c90], %42 {strides = array<i32>} : memref<8x188xf32, #tpu.memory_space<vmem>>, vector<8x1xf32>,
    %44 = vector.extract_strided_slice %11 {offsets = [0, 0], sizes = [8, 32], strides = [1, 1]} : vector<8x204xf32> to vector<8x32xf32>
    %cst_25 = arith.constant dense<0xFF800000> : vector<8xf32>
    %45 = vector.multi_reduction <maximumf>, %44, %cst_25 [1] : vector<8x32xf32> to vector<8xf32>
    %46 = vector.shape_cast %45 : vector<8xf32> to vector<8x1xf32>
    %c0_26 = arith.constant 0 : index
    %c91 = arith.constant 91 : index
    %47 = vector.load %arg12[%c0_26, %c91] : memref<8x188xf32, #tpu.memory_space<vmem>>, vector<8x1xf32>
    tpu.vector_store %arg12[%c0_26, %c91], %46 {strides = array<i32>} : memref<8x188xf32, #tpu.memory_space<vmem>>, vector<8x1xf32>,
    %48 = vector.extract_strided_slice %10 {offsets = [0, 32], sizes = [8, 32], strides = [1, 1]} : vector<8x204xf32> to vector<8x32xf32>
    %cst_27 = arith.constant dense<0xFF800000> : vector<8xf32>
    %49 = vector.multi_reduction <maximumf>, %48, %cst_27 [1] : vector<8x32xf32> to vector<8xf32>
    %50 = vector.shape_cast %49 : vector<8xf32> to vector<8x1xf32>
    %c0_28 = arith.constant 0 : index
    %c92 = arith.constant 92 : index
    %51 = vector.load %arg12[%c0_28, %c92] : memref<8x188xf32, #tpu.memory_space<vmem>>, vector<8x1xf32>
    tpu.vector_store %arg12[%c0_28, %c92], %50 {strides = array<i32>} : memref<8x188xf32, #tpu.memory_space<vmem>>, vector<8x1xf32>,
    %52 = vector.extract_strided_slice %11 {offsets = [0, 32], sizes = [8, 32], strides = [1, 1]} : vector<8x204xf32> to vector<8x32xf32>
    %cst_29 = arith.constant dense<0xFF800000> : vector<8xf32>
    %53 = vector.multi_reduction <maximumf>, %52, %cst_29 [1] : vector<8x32xf32> to vector<8xf32>
    %54 = vector.shape_cast %53 : vector<8xf32> to vector<8x1xf32>
    %c0_30 = arith.constant 0 : index
    %c93 = arith.constant 93 : index
    %55 = vector.load %arg12[%c0_30, %c93] : memref<8x188xf32, #tpu.memory_space<vmem>>, vector<8x1xf32>
    tpu.vector_store %arg12[%c0_30, %c93], %54 {strides = array<i32>} : memref<8x188xf32, #tpu.memory_space<vmem>>, vector<8x1xf32>,
    %56 = vector.extract_strided_slice %10 {offsets = [0, 64], sizes = [8, 32], strides = [1, 1]} : vector<8x204xf32> to vector<8x32xf32>
    %cst_31 = arith.constant dense<0xFF800000> : vector<8xf32>
    %57 = vector.multi_reduction <maximumf>, %56, %cst_31 [1] : vector<8x32xf32> to vector<8xf32>
    %58 = vector.shape_cast %57 : vector<8xf32> to vector<8x1xf32>
    %c0_32 = arith.constant 0 : index
    %c94 = arith.constant 94 : index
    %59 = vector.load %arg12[%c0_32, %c94] : memref<8x188xf32, #tpu.memory_space<vmem>>, vector<8x1xf32>
    tpu.vector_store %arg12[%c0_32, %c94], %58 {strides = array<i32>} : memref<8x188xf32, #tpu.memory_space<vmem>>, vector<8x1xf32>,
    %60 = vector.extract_strided_slice %11 {offsets = [0, 64], sizes = [8, 32], strides = [1, 1]} : vector<8x204xf32> to vector<8x32xf32>
    %cst_33 = arith.constant dense<0xFF800000> : vector<8xf32>
    %61 = vector.multi_reduction <maximumf>, %60, %cst_33 [1] : vector<8x32xf32> to vector<8xf32>
    %62 = vector.shape_cast %61 : vector<8xf32> to vector<8x1xf32>
    %c0_34 = arith.constant 0 : index
    %c95 = arith.constant 95 : index
    %63 = vector.load %arg12[%c0_34, %c95] : memref<8x188xf32, #tpu.memory_space<vmem>>, vector<8x1xf32>
    tpu.vector_store %arg12[%c0_34, %c95], %62 {strides = array<i32>} : memref<8x188xf32, #tpu.memory_space<vmem>>, vector<8x1xf32>,
    %c0_35 = arith.constant 0 : index
    %c50_36 = arith.constant 50 : index
    %64 = vector.load %arg12[%c0_35, %c50_36] : memref<8x188xf32, #tpu.memory_space<vmem>>, vector<8x46xf32>
    %c0_37 = arith.constant 0 : index
    %c0_38 = arith.constant 0 : index
    %65 = vector.load %arg9[%c0_37, %c0_38] : memref<6x46xf32, #tpu.memory_space<vmem>>, vector<6x46xf32>
    %66 = vector.extract_strided_slice %65 {offsets = [0, 0], sizes = [1, 46], strides = [1, 1]} : vector<6x46xf32> to vector<1x46xf32>
    %67 = vector.broadcast %66 : vector<1x46xf32> to vector<8x46xf32>
    %68 = arith.mulf %64, %67 : vector<8x46xf32>
    %69 = vector.extract_strided_slice %65 {offsets = [1, 0], sizes = [1, 46], strides = [1, 1]} : vector<6x46xf32> to vector<1x46xf32>
    %70 = vector.broadcast %69 : vector<1x46xf32> to vector<8x46xf32>
    %71 = arith.cmpf ogt, %68, %70 : vector<8x46xf32>
    %72 = vector.extract_strided_slice %65 {offsets = [2, 0], sizes = [1, 46], strides = [1, 1]} : vector<6x46xf32> to vector<1x46xf32>
    %cst_39 = arith.constant 0.000000e+00 : f32
    %73 = vector.shape_cast %72 : vector<1x46xf32> to vector<1x46xf32>
    %74 = vector.broadcast %73 : vector<1x46xf32> to vector<8x46xf32>
    %75 = vector.broadcast %cst_39 : f32 to vector<8x46xf32>
    %76 = arith.select %71, %74, %75 : vector<8x46xi1>, vector<8x46xf32>
    %c0_40 = arith.constant 0 : index
    %c96 = arith.constant 96 : index
    %77 = vector.load %arg12[%c0_40, %c96] : memref<8x188xf32, #tpu.memory_space<vmem>>, vector<8x46xf32>
    tpu.vector_store %arg12[%c0_40, %c96], %76 {strides = array<i32>} : memref<8x188xf32, #tpu.memory_space<vmem>>, vector<8x46xf32>,
    %78 = vector.extract_strided_slice %65 {offsets = [3, 0], sizes = [1, 46], strides = [1, 1]} : vector<6x46xf32> to vector<1x46xf32>
    %79 = vector.broadcast %78 : vector<1x46xf32> to vector<8x46xf32>
    %80 = arith.mulf %64, %79 : vector<8x46xf32>
    %81 = vector.extract_strided_slice %65 {offsets = [4, 0], sizes = [1, 46], strides = [1, 1]} : vector<6x46xf32> to vector<1x46xf32>
    %82 = vector.broadcast %81 : vector<1x46xf32> to vector<8x46xf32>
    %83 = arith.cmpf ogt, %80, %82 : vector<8x46xf32>
    %84 = vector.extract_strided_slice %65 {offsets = [5, 0], sizes = [1, 46], strides = [1, 1]} : vector<6x46xf32> to vector<1x46xf32>
    %cst_41 = arith.constant 0.000000e+00 : f32
    %85 = vector.shape_cast %84 : vector<1x46xf32> to vector<1x46xf32>
    %86 = vector.broadcast %85 : vector<1x46xf32> to vector<8x46xf32>
    %87 = vector.broadcast %cst_41 : f32 to vector<8x46xf32>
    %88 = arith.select %83, %86, %87 : vector<8x46xi1>, vector<8x46xf32>
    %c0_42 = arith.constant 0 : index
    %c142 = arith.constant 142 : index
    %89 = vector.load %arg12[%c0_42, %c142] : memref<8x188xf32, #tpu.memory_space<vmem>>, vector<8x46xf32>
    tpu.vector_store %arg12[%c0_42, %c142], %88 {strides = array<i32>} : memref<8x188xf32, #tpu.memory_space<vmem>>, vector<8x46xf32>,
    %c0_43 = arith.constant 0 : index
    %c0_44 = arith.constant 0 : index
    %90 = vector.load %arg12[%c0_43, %c0_44] : memref<8x188xf32, #tpu.memory_space<vmem>>, vector<8x188xf32>
    %c0_45 = arith.constant 0 : index
    %c0_46 = arith.constant 0 : index
    %91 = vector.load %arg8[%c0_45, %c0_46] : memref<188x2xf32, #tpu.memory_space<vmem>>, vector<188x2xf32>
    %cst_47 = arith.constant dense<0.000000e+00> : vector<8x2xf32>
    %92 = tpu.matmul %90, %91, %cst_47 {dimension_numbers = #tpu.dot_dimension_numbers<[1], [0], [0], [1], [0, 0, 1, 1], [], []>} : vector<8x188xf32>, vector<188x2xf32>, vector<8x2xf32> -> vector<8x2xf32>
    %93 = vector.extract_strided_slice %92 {offsets = [0, 0], sizes = [8, 1], strides = [1, 1]} : vector<8x2xf32> to vector<8x1xf32>
    %c0_48 = arith.constant 0 : index
    %94 = memref.load %arg10[%c0_48] : memref<1xf32, #tpu.memory_space<smem>>
    %95 = vector.broadcast %94 : f32 to vector<8x1xf32>
    %96 = arith.addf %93, %95 : vector<8x1xf32>
    %97 = vector.extract_strided_slice %92 {offsets = [0, 1], sizes = [8, 1], strides = [1, 1]} : vector<8x2xf32> to vector<8x1xf32>
    %cst_49 = arith.constant 5.000000e-01 : f32
    %98 = vector.broadcast %cst_49 : f32 to vector<8x1xf32>
    %99 = arith.mulf %98, %96 : vector<8x1xf32>
    %cst_50 = arith.constant 5.000000e-01 : f32
    %100 = vector.broadcast %cst_50 : f32 to vector<8x1xf32>
    %101 = arith.mulf %100, %97 : vector<8x1xf32>
    %102 = arith.subf %99, %101 : vector<8x1xf32>
    %103 = math.exp %102 : vector<8x1xf32>
    %c0_51 = arith.constant 0 : index
    %c0_52 = arith.constant 0 : index
    %104 = vector.load %arg11[%c0_51, %c0_52] : memref<8x1xf32, #tpu.memory_space<vmem>>, vector<8x1xf32>
    tpu.vector_store %arg11[%c0_51, %c0_52], %103 {strides = array<i32>} : memref<8x1xf32, #tpu.memory_space<vmem>>, vector<8x1xf32>,
    return
  }
  func.func @transform_0(%arg0: i32) -> (i32, i32) {
    %c0_i32 = arith.constant 0 : i32
    %c0_i32_0 = arith.constant 0 : i32
    return %arg0, %c0_i32 : i32, i32
  }
  func.func @transform_1(%arg0: i32) -> (i32, i32) {
    %c0_i32 = arith.constant 0 : i32
    %c0_i32_0 = arith.constant 0 : i32
    %c0_i32_1 = arith.constant 0 : i32
    return %c0_i32, %c0_i32_0 : i32, i32
  }
  func.func @transform_2(%arg0: i32) -> (i32, i32) {
    %c0_i32 = arith.constant 0 : i32
    %c0_i32_0 = arith.constant 0 : i32
    %c0_i32_1 = arith.constant 0 : i32
    return %c0_i32, %c0_i32_0 : i32, i32
  }
  func.func @transform_3(%arg0: i32) -> (i32, i32) {
    %c0_i32 = arith.constant 0 : i32
    %c0_i32_0 = arith.constant 0 : i32
    %c0_i32_1 = arith.constant 0 : i32
    return %c0_i32, %c0_i32_0 : i32, i32
  }
  func.func @transform_4(%arg0: i32) -> (i32, i32) {
    %c0_i32 = arith.constant 0 : i32
    %c0_i32_0 = arith.constant 0 : i32
    %c0_i32_1 = arith.constant 0 : i32
    return %c0_i32, %c0_i32_0 : i32, i32
  }
  func.func @transform_5(%arg0: i32) -> (i32, i32) {
    %c0_i32 = arith.constant 0 : i32
    %c0_i32_0 = arith.constant 0 : i32
    %c0_i32_1 = arith.constant 0 : i32
    return %c0_i32, %c0_i32_0 : i32, i32
  }
  func.func @transform_6(%arg0: i32) -> (i32, i32) {
    %c0_i32 = arith.constant 0 : i32
    %c0_i32_0 = arith.constant 0 : i32
    %c0_i32_1 = arith.constant 0 : i32
    return %c0_i32, %c0_i32_0 : i32, i32
  }
  func.func @transform_7(%arg0: i32) -> (i32, i32) {
    %c0_i32 = arith.constant 0 : i32
    %c0_i32_0 = arith.constant 0 : i32
    %c0_i32_1 = arith.constant 0 : i32
    return %c0_i32, %c0_i32_0 : i32, i32
  }
  func.func @transform_8(%arg0: i32) -> (i32, i32) {
    %c0_i32 = arith.constant 0 : i32
    %c0_i32_0 = arith.constant 0 : i32
    %c0_i32_1 = arith.constant 0 : i32
    return %c0_i32, %c0_i32_0 : i32, i32
  }
  func.func @transform_9(%arg0: i32) -> i32 {
    %c0_i32 = arith.constant 0 : i32
    %c0_i32_0 = arith.constant 0 : i32
    return %c0_i32 : i32
  }
  func.func @transform_10(%arg0: i32) -> (i32, i32) {
    %c0_i32 = arith.constant 0 : i32
    %c0_i32_0 = arith.constant 0 : i32
    return %arg0, %c0_i32 : i32, i32
  }
}

</mosaic_0001>

<bundles_post_ra>
// kernel: tpu_custom_call.1
= control target key start
LH: loop header
LB: loop body
LE: loop exit
PB: predicated region body
PF: predicated region fallthrough
CT: control target
= control target key end

     0   :  { %s1384_s15 = smov 52   ;;  %vm144_vm0 = vcmask 211968   ;;  %vm148_vm1 = vcmask 1041408   ;;  %vm1386_vm2 = vmmov 1   ;;  %vm517_vm4 = vcmask 424960   ;;  %s1387_s22 = smov 126   ;;  %s2290_s1 = inlined_call_operand.vmem [shape: f32[410,232], index: 1, kind: input, shape index: {}]   ;;  %s2291_s0 = inlined_call_operand.vmem [shape: f32[8,410], index: 0, kind: input, shape index: {}]   ;;  %s2292_s2 = inlined_call_operand.vmem [shape: f32[410,16], index: 2, kind: input, shape index: {}]   ;;  %s2293_s4 = inlined_call_operand.vmem [shape: f32[200,50], index: 4, kind: input, shape index: {}]   ;;  %s2294_s3 = inlined_call_operand.vmem [shape: f32[204,8], index: 3, kind: input, shape index: {}]   ;;  %s2295_s5 = inlined_call_operand.vmem [shape: f32[1,200], index: 5, kind: input, shape index: {}]   ;;  %s2296_s8 = inlined_call_operand.vmem [shape: f32[6,46], index: 8, kind: input, shape index: {}]   ;;  %s2297_s6 = inlined_call_operand.vmem [shape: f32[1,50], index: 6, kind: input, shape index: {}]   ;;  %s2298_s7 = inlined_call_operand.vmem [shape: f32[188,2], index: 7, kind: input, shape index: {}]   ;;  %s2299_s9 = inlined_call_operand.<no memory space> [shape: f32[1], index: 9, kind: input, shape index: {}]   ;;  %s2300_s10 = inlined_call_operand.vmem [shape: f32[8,1], index: 10, kind: output, shape index: {}]  }
   0x1   :  { %v41_v0 = vld [vmem:[%s2290_s1 + $0x8] sm:$0xff]  ;;  %v43_v1 = vld [vmem:[%s2290_s1 + $0x18] sm:$0xff]  ;;  %v40_v2 = vld [vmem:[%s2290_s1] sm:$0xff]  ;;  %vm588_vm5 = vcmask 1043456   ;;  %vm543_vm7 = vcmask 1031168   ;;  %vm584_vm8 = vcmask 621568  }
   0x2   :  { %v1079_v3 = vpack.c.bf16 %v43_v1, %v41_v0  ;;  %v42_v4 = vld [vmem:[%s2290_s1 + $0x10] sm:$0xff]  ;;  %v45_v5 = vld [vmem:[%s2290_s1 + $0x28] sm:$0xff]  ;;  %v47_v6 = vld [vmem:[%s2290_s1 + $0x38] sm:$0xff]  ;;  %s1389_s18 = smov 112   ;;  %vm710_vm10 = vcmask 588800   ;;  %vm804_vm11 = vcmask 277520  }
   0x3   :  { %v1081_v7 = vpack.c.bf16 %v42_v4, %v40_v2  ;;  %v1083_v8 = vpack.c.bf16 %v47_v6, %v45_v5  ;;  %v44_v9 = vld [vmem:[%s2290_s1 + $0x20] sm:$0xff]  ;;  %v46_v10 = vld [vmem:[%s2290_s1 + $0x30] sm:$0xff]  ;;  %v49_v11 = vld [vmem:[%s2290_s1 + $0x48] sm:$0xff]  ;;  %vm816_vm12 = vcmask 539920   ;;  %vm822_vm13 = vcmask 1048432   ;;  %s1391_s19 = smov 106  }
   0x4   :  { %1080 = vmatprep.subr.bf16.mxu0 %v1079_v3  ;;  %v51_v12 = vld [vmem:[%s2290_s1 + $0x58] sm:$0xff]  ;;  %v1085_v13 = vpack.c.bf16 %v46_v10, %v44_v9  ;;  %v48_v15 = vld [vmem:[%s2290_s1 + $0x40] sm:$0xff]  ;;  %v50_v16 = vld [vmem:[%s2290_s1 + $0x50] sm:$0xff]  ;;  %vm824_vm14 = vcmask 113664   ;;  %vm837_vm15 = vcmask 375920   ;;  %s1393_s23 = smov 50  }
   0x5   :  { %1082 = vmatpush1.bf16.msra.mxu0 %v1081_v7  ;;  %v1087_v14 = vpack.c.bf16 %v51_v12, %v49_v11  ;;  %v53_v17 = vld [vmem:[%s2290_s1 + $0x68] sm:$0xff]  ;;  %v55_v18 = vld [vmem:[%s2290_s1 + $0x78] sm:$0xff]  ;;  %v1089_v19 = vpack.c.bf16 %v50_v16, %v48_v15  ;;  %v52_v21 = vld [vmem:[%s2290_s1 + $0x60] sm:$0xff]  ;;  %s1397_s20 = smov 127  }
   0x6   :  { %1084 = vmatprep.subr.bf16.mxu0 %v1083_v8  ;;  %v1091_v20 = vpack.c.bf16 %v55_v18, %v53_v17  ;;  %v54_v22 = vld [vmem:[%s2290_s1 + $0x70] sm:$0xff]  ;;  %v57_v23 = vld [vmem:[%s2290_s1 + $0x88] sm:$0xff]  ;;  %v59_v24 = vld [vmem:[%s2290_s1 + $0x98] sm:$0xff] }
   0x7   :  { %v1093_v25 = vpack.c.bf16 %v54_v22, %v52_v21  ;;  %v1095_v26 = vpack.c.bf16 %v59_v24, %v57_v23  ;;  %v56_v27 = vld [vmem:[%s2290_s1 + $0x80] sm:$0xff]  ;;  %v58_v28 = vld [vmem:[%s2290_s1 + $0x90] sm:$0xff]  ;;  %v61_v29 = vld [vmem:[%s2290_s1 + $0xa8] sm:$0xff] }
   0x8   :  { %v63_v30 = vld [vmem:[%s2290_s1 + $0xb8] sm:$0xff]  ;;  %v1097_v31 = vpack.c.bf16 %v58_v28, %v56_v27  ;;  %v60_v33 = vld [vmem:[%s2290_s1 + $0xa0] sm:$0xff]  ;;  %v62_v34 = vld [vmem:[%s2290_s1 + $0xb0] sm:$0xff] }
   0x9   :  { %1086 = vmatpush1.bf16.msra.mxu0 %v1085_v13  ;;  %v1099_v32 = vpack.c.bf16 %v63_v30, %v61_v29  ;;  %v65_v35 = vld [vmem:[%s2290_s1 + $0xc8] sm:$0xff]  ;;  %v67_v36 = vld [vmem:[%s2290_s1 + $0xd8] sm:$0xff]  ;;  %v1101_v37 = vpack.c.bf16 %v62_v34, %v60_v33  ;;  %v64_v39 = vld [vmem:[%s2290_s1 + $0xc0] sm:$0xff] }
   0xa   :  { %1088 = vmatprep.subr.bf16.mxu0 %v1087_v14  ;;  %v1103_v38 = vpack.c.bf16 %v67_v36, %v65_v35  ;;  %v66_v40 = vld [vmem:[%s2290_s1 + $0xd0] sm:$0xff]  ;;  %v1540_v41 = vld [vmem:[%s2291_s0 + $0x8] sm:$0xff]  ;;  %v71_v43 = vld [vmem:[%s2290_s1 + $0xf8] sm:$0xff] }
   0xb   :  { %v69_v42 = vld [vmem:[%s2290_s1 + $0xe8] sm:$0xff]  ;;  %219 = vmatprep.mubr.f32.mxu0 %v1540_v41  ;;  %511 = vrot.lane.b32.xlu0 %v1540_v41, %s1384_s15  ;;  %v1105_v44 = vpack.c.bf16 %v66_v40, %v64_v39  ;;  %v68_v46 = vld [vmem:[%s2290_s1 + $0xe0] sm:$0xff]  ;;  %v70_v47 = vld [vmem:[%s2290_s1 + $0xf0] sm:$0xff]  ;;  %v298_v48 = vmul.f32 %v1540_v41, %v1540_v41 }
   0xc   :  { %v1107_v45 = vpack.c.bf16 %v71_v43, %v69_v42  ;;  %v73_v49 = vld [vmem:[%s2290_s1 + $0x108] sm:$0xff]  ;;  %v75_v50 = vld [vmem:[%s2290_s1 + $0x118] sm:$0xff]  ;;  %v1109_v51 = vpack.c.bf16 %v70_v47, %v68_v46  ;;  %v72_v53 = vld [vmem:[%s2290_s1 + $0x100] sm:$0xff] }
   0xd   :  { %1090 = vmatpush1.bf16.msra.mxu0 %v1089_v19  ;;  %423 = vmatprep.mubr.f32.mxu1 %v298_v48  ;;  %v1111_v52 = vpack.c.bf16 %v75_v50, %v73_v49  ;;  %v74_v54 = vld [vmem:[%s2290_s1 + $0x110] sm:$0xff]  ;;  %v77_v55 = vld [vmem:[%s2290_s1 + $0x128] sm:$0xff]  ;;  %v79_v56 = vld [vmem:[%s2290_s1 + $0x138] sm:$0xff] }
   0xe   :  { %1092 = vmatprep.subr.bf16.mxu0 %v1091_v20  ;;  %v1579_v57 = vld [vmem:[%s2291_s0 + $0x18] sm:$0xff]  ;;  %v1584_v58 = vld [vmem:[%s2291_s0 + $0x10] sm:$0xff]  ;;  %v1113_v59 = vpack.c.bf16 %v74_v54, %v72_v53  ;;  %v1115_v60 = vpack.c.bf16 %v79_v56, %v77_v55  ;;  %v76_v61 = vld [vmem:[%s2290_s1 + $0x120] sm:$0xff] }
   0xf   :  { %515 = vrot.lane.b32.xlu1 %v1579_v57, %s1384_s15  ;;  %513 = vrot.lane.b32.xlu0 %v1584_v58, %s1384_s15  ;;  %v78_v62 = vld [vmem:[%s2290_s1 + $0x130] sm:$0xff]  ;;  %v81_v63 = vld [vmem:[%s2290_s1 + $0x148] sm:$0xff]  ;;  %vm1951_vm3 = vmpackc.low %vm148_vm1, %vm1386_vm2  ;;  %vm831_vm1 = vcmask 802320  }
  0x10   :  { %v83_v0 = vld [vmem:[%s2290_s1 + $0x158] sm:$0xff]  ;;  %v80_v1 = vld [vmem:[%s2290_s1 + $0x140] sm:$0xff]  ;;  %v82_v2 = vld [vmem:[%s2290_s1 + $0x150] sm:$0xff]  ;;  %v1117_v3 = vpack.c.bf16 %v78_v62, %v76_v61 }
  0x11   :  { %1094 = vmatpush1.bf16.msra.mxu0 %v1093_v25  ;;  %v85_v4 = vld [vmem:[%s2290_s1 + $0x168] sm:$0xff]  ;;  %v87_v5 = vld [vmem:[%s2290_s1 + $0x178] sm:$0xff]  ;;  %v317_v6 = vld [vmem:[%s2292_s2 + $0x80] sm:$0xff]  ;;  %v1119_v7 = vpack.c.bf16 %v83_v0, %v81_v63  ;;  %v1121_v20 = vpack.c.bf16 %v82_v2, %v80_v1 }
  0x12   :  { %1096 = vmatprep.subr.bf16.mxu0 %v1095_v26  ;;  %v318_v8 = vld [vmem:[%s2292_s2 + $0x88] sm:$0xff]  ;;  %v301_v9 = vld [vmem:[%s2292_s2] sm:$0xff]  ;;  %v319_v13 = vld [vmem:[%s2292_s2 + $0x90] sm:$0xff]  ;;  %v1123_v21 = vpack.c.bf16 %v87_v5, %v85_v4 }
  0x13   :  { %v302_v10 = vld [vmem:[%s2292_s2 + $0x8] sm:$0xff]  ;;  %v1185_v11 = vpack.c.bf16 %v318_v8, %v317_v6  ;;  %v320_v14 = vld [vmem:[%s2292_s2 + $0x98] sm:$0xff]  ;;  %v303_v15 = vld [vmem:[%s2292_s2 + $0x10] sm:$0xff] }
  0x14   :  { %v1187_v12 = vpack.c.bf16 %v302_v10, %v301_v9  ;;  %v1189_v16 = vpack.c.bf16 %v320_v14, %v319_v13  ;;  %v304_v17 = vld [vmem:[%s2292_s2 + $0x18] sm:$0xff]  ;;  %v321_v18 = vld [vmem:[%s2292_s2 + $0xa0] sm:$0xff]  ;;  %v322_v19 = vld [vmem:[%s2292_s2 + $0xa8] sm:$0xff] }
  0x15   :  { %1098 = vmatpush1.bf16.msra.mxu0 %v1097_v31  ;;  %1186 = vmatprep.subr.bf16.mxu1 %v1185_v11  ;;  %v84_v22 = vld [vmem:[%s2290_s1 + $0x160] sm:$0xff]  ;;  %v86_v23 = vld [vmem:[%s2290_s1 + $0x170] sm:$0xff]  ;;  %v89_v24 = vld [vmem:[%s2290_s1 + $0x188] sm:$0xff]  ;;  %v1191_v25 = vpack.c.bf16 %v304_v17, %v303_v15  ;;  %v1193_v27 = vpack.c.bf16 %v322_v19, %v321_v18 }
  0x16   :  { %1100 = vmatprep.subr.bf16.mxu0 %v1099_v32  ;;  %1188 = vmatpush3.bf16.msra.mxu1 %v1187_v12  ;;  %v91_v26 = vld [vmem:[%s2290_s1 + $0x198] sm:$0xff]  ;;  %v305_v28 = vld [vmem:[%s2292_s2 + $0x20] sm:$0xff]  ;;  %v306_v29 = vld [vmem:[%s2292_s2 + $0x28] sm:$0xff]  ;;  %v1125_v32 = vpack.c.bf16 %v86_v23, %v84_v22 }
  0x17   :  { %1190 = vmatprep.subr.bf16.mxu1 %v1189_v16  ;;  %v323_v30 = vld [vmem:[%s2292_s2 + $0xb0] sm:$0xff]  ;;  %v324_v31 = vld [vmem:[%s2292_s2 + $0xb8] sm:$0xff]  ;;  %v1127_v33 = vpack.c.bf16 %v91_v26, %v89_v24  ;;  %v88_v34 = vld [vmem:[%s2290_s1 + $0x180] sm:$0xff] }
  0x18   :  { %v90_v35 = vld [vmem:[%s2290_s1 + $0x190] sm:$0xff]  ;;  %v93_v36 = vld [vmem:[%s2290_s1 + $0x1a8] sm:$0xff]  ;;  %v1197_v39 = vpack.c.bf16 %v324_v31, %v323_v30  ;;  %v308_v42 = vld [vmem:[%s2292_s2 + $0x38] sm:$0xff] }
  0x19   :  { %1102 = vmatpush1.bf16.msra.mxu0 %v1101_v37  ;;  %v1195_v37 = vpack.c.bf16 %v306_v29, %v305_v28  ;;  %v307_v40 = vld [vmem:[%s2292_s2 + $0x30] sm:$0xff]  ;;  %v325_v43 = vld [vmem:[%s2292_s2 + $0xc0] sm:$0xff]  ;;  %v97_v49 = vld [vmem:[%s2290_s1 + $0x1c8] sm:$0xff] }
  0x1a   :  { %1104 = vmatprep.subr.bf16.mxu0 %v1103_v38  ;;  %1192 = vmatpush3.bf16.msra.mxu1 %v1191_v25  ;;  %v95_v38 = vld [vmem:[%s2290_s1 + $0x1b8] sm:$0xff]  ;;  %v92_v47 = vld [vmem:[%s2290_s1 + $0x1a0] sm:$0xff]  ;;  %v94_v48 = vld [vmem:[%s2290_s1 + $0x1b0] sm:$0xff]  ;;  %v1199_v50 = vpack.c.bf16 %v308_v42, %v307_v40 }
  0x1b   :  { %1194 = vmatprep.subr.bf16.mxu1 %v1193_v27  ;;  %v1131_v46 = vpack.c.bf16 %v95_v38, %v93_v36  ;;  %v309_v53 = vld [vmem:[%s2292_s2 + $0x40] sm:$0xff]  ;;  %v310_v54 = vld [vmem:[%s2292_s2 + $0x48] sm:$0xff]  ;;  %v327_v55 = vld [vmem:[%s2292_s2 + $0xd0] sm:$0xff] }
  0x1c   :  { %v328_v56 = vld [vmem:[%s2292_s2 + $0xd8] sm:$0xff]  ;;  %v96_v61 = vld [vmem:[%s2290_s1 + $0x1c0] sm:$0xff]  ;;  %v98_v62 = vld [vmem:[%s2290_s1 + $0x1d0] sm:$0xff]  ;;  %v1203_v0 = vpack.c.bf16 %v310_v54, %v309_v53 }
  0x1d   :  { %1106 = vmatpush1.bf16.msra.mxu0 %v1105_v44  ;;  %v326_v44 = vld [vmem:[%s2292_s2 + $0xc8] sm:$0xff]  ;;  %v103_v1 = vld [vmem:[%s2290_s1 + $0x1f8] sm:$0xff]  ;;  %v1205_v2 = vpack.c.bf16 %v328_v56, %v327_v55  ;;  %v329_v5 = vld [vmem:[%s2292_s2 + $0xe0] sm:$0xff] }
  0x1e   :  { %1108 = vmatprep.subr.bf16.mxu0 %v1107_v45  ;;  %v1129_v45 = vpack.c.bf16 %v90_v35, %v88_v34  ;;  %1196 = vmatpush3.bf16.msra.mxu1 %v1195_v37  ;;  %v101_v63 = vld [vmem:[%s2290_s1 + $0x1e8] sm:$0xff]  ;;  %v312_v4 = vld [vmem:[%s2292_s2 + $0x58] sm:$0xff]  ;;  %v100_v9 = vld [vmem:[%s2290_s1 + $0x1e0] sm:$0xff] }
  0x1f   :  { %1198 = vmatprep.subr.bf16.mxu1 %v1197_v39  ;;  %v330_v6 = vld [vmem:[%s2292_s2 + $0xe8] sm:$0xff]  ;;  %v1139_v8 = vpack.c.bf16 %v103_v1, %v101_v63  ;;  %v102_v10 = vld [vmem:[%s2290_s1 + $0x1f0] sm:$0xff]  ;;  %v107_v13 = vld [vmem:[%s2290_s1 + $0x218] sm:$0xff] }
  0x20   :  { %v105_v11 = vld [vmem:[%s2290_s1 + $0x208] sm:$0xff]  ;;  %v1209_v14 = vpack.c.bf16 %v330_v6, %v329_v5  ;;  %v313_v15 = vld [vmem:[%s2292_s2 + $0x60] sm:$0xff]  ;;  %v331_v17 = vld [vmem:[%s2292_s2 + $0xf0] sm:$0xff]  ;;  %v1141_v19 = vpack.c.bf16 %v102_v10, %v100_v9 }
  0x21   :  { %1110 = vmatpush1.bf16.msra.mxu0 %v1109_v51  ;;  %v99_v51 = vld [vmem:[%s2290_s1 + $0x1d8] sm:$0xff]  ;;  %v314_v16 = vld [vmem:[%s2292_s2 + $0x68] sm:$0xff]  ;;  %v106_v22 = vld [vmem:[%s2290_s1 + $0x210] sm:$0xff] }
  0x22   :  { %1112 = vmatprep.subr.bf16.mxu0 %v1111_v52  ;;  %v1201_v52 = vpack.c.bf16 %v326_v44, %v325_v43  ;;  %1200 = vmatpush3.bf16.msra.mxu1 %v1199_v50  ;;  %v332_v18 = vld [vmem:[%s2292_s2 + $0xf8] sm:$0xff]  ;;  %v109_v23 = vld [vmem:[%s2290_s1 + $0x228] sm:$0xff]  ;;  %v1211_v24 = vpack.c.bf16 %v314_v16, %v313_v15  ;;  %v315_v27 = vld [vmem:[%s2292_s2 + $0x70] sm:$0xff] }
  0x23   :  { %v111_v25 = vld [vmem:[%s2290_s1 + $0x238] sm:$0xff]  ;;  %v1213_v26 = vpack.c.bf16 %v332_v18, %v331_v17  ;;  %v1783_v29 = vld [vmem:[%s2291_s0] sm:$0xff]  ;;  %v113_v34 = vld [vmem:[%s2290_s1 + $0x248] sm:$0xff] }
  0x24   :  { %1202 = vmatprep.subr.bf16.mxu1 %v1201_v52  ;;  %v316_v28 = vld [vmem:[%s2292_s2 + $0x78] sm:$0xff]  ;;  %v1147_v31 = vpack.c.bf16 %v111_v25, %v109_v23  ;;  %v333_v37 = vld [vmem:[%s2292_s2 + $0x100] sm:$0xff]  ;;  %v334_v38 = vld [vmem:[%s2292_s2 + $0x108] sm:$0xff]  ;;  %v297_v40 = vmul.f32 %v1783_v29, %v1783_v29 }
  0x25   :  { %1114 = vmatpush1.bf16.msra.mxu0 %v1113_v59  ;;  %v1133_v59 = vpack.c.bf16 %v94_v48, %v92_v47  ;;  %v1215_v35 = vpack.c.bf16 %v316_v28, %v315_v27  ;;  %v115_v36 = vld [vmem:[%s2290_s1 + $0x258] sm:$0xff]  ;;  %v112_v43 = vld [vmem:[%s2290_s1 + $0x240] sm:$0xff]  ;;  %v114_v44 = vld [vmem:[%s2290_s1 + $0x250] sm:$0xff]  ;;  %v300_v48 = vmul.f32 %v1579_v57, %v1579_v57 }
  0x26   :  { %1116 = vmatprep.subr.bf16.mxu0 %v1115_v60  ;;  %v1135_v60 = vpack.c.bf16 %v99_v51, %v97_v49  ;;  %1204 = vmatpush3.bf16.msra.mxu1 %v1203_v0  ;;  %v1151_v42 = vpack.c.bf16 %v115_v36, %v113_v34  ;;  %v119_v47 = vld [vmem:[%s2290_s1 + $0x278] sm:$0xff]  ;;  %v1385_v49 = vmov 0.0|0.0   ;;  %v335_v50 = vld [vmem:[%s2292_s2 + $0x110] sm:$0xff]  ;;  %v1153_v52 = vpack.c.bf16 %v114_v44, %v112_v43  ;;  %v121_v55 = vld [vmem:[%s2290_s1 + $0x288] sm:$0xff] }
  0x27   :  { %1206 = vmatprep.subr.bf16.mxu1 %v1205_v2  ;;  %v336_v51 = vld [vmem:[%s2292_s2 + $0x118] sm:$0xff]  ;;  %v118_v54 = vld [vmem:[%s2290_s1 + $0x270] sm:$0xff]  ;;  %v120_v0 = vld [vmem:[%s2290_s1 + $0x280] sm:$0xff] }
  0x28   :  { %v1221_v56 = vpack.c.bf16 %v336_v51, %v335_v50  ;;  %v122_v1 = vld [vmem:[%s2290_s1 + $0x290] sm:$0xff]  ;;  %v125_v2 = vld [vmem:[%s2290_s1 + $0x2a8] sm:$0xff]  ;;  %v340_v6 = vld [vmem:[%s2292_s2 + $0x138] sm:$0xff] }
  0x29   :  { %1118 = vmatpush1.bf16.msra.mxu0 %v1117_v3  ;;  %v311_v3 = vld [vmem:[%s2292_s2 + $0x50] sm:$0xff]  ;;  %v124_v9 = vld [vmem:[%s2290_s1 + $0x2a0] sm:$0xff]  ;;  %v342_v15 = vld [vmem:[%s2292_s2 + $0x148] sm:$0xff] }
  0x2a   :  { %1120 = vmatprep.subr.bf16.mxu0 %v1119_v7  ;;  %v1137_v7 = vpack.c.bf16 %v98_v62, %v96_v61  ;;  %v1207_v12 = vpack.c.bf16 %v312_v4, %v311_v3  ;;  %v338_v61 = vld [vmem:[%s2292_s2 + $0x128] sm:$0xff]  ;;  %v127_v4 = vld [vmem:[%s2290_s1 + $0x2b8] sm:$0xff]  ;;  %v339_v5 = vld [vmem:[%s2292_s2 + $0x130] sm:$0xff] }
  0x2b   :  { %v126_v10 = vld [vmem:[%s2290_s1 + $0x2b0] sm:$0xff]  ;;  %v128_v18 = vld [vmem:[%s2290_s1 + $0x2c0] sm:$0xff]  ;;  %v346_v34 = vld [vmem:[%s2292_s2 + $0x168] sm:$0xff] }
  0x2c   :  { %1208 = vmatpush3.bf16.msra.mxu1 %v1207_v12  ;;  %v1227_v12 = vpack.c.bf16 %v340_v6, %v339_v5  ;;  %v1165_v16 = vpack.c.bf16 %v126_v10, %v124_v9  ;;  %v343_v23 = vld [vmem:[%s2292_s2 + $0x150] sm:$0xff]  ;;  %v132_v27 = vld [vmem:[%s2290_s1 + $0x2e0] sm:$0xff]  ;;  %v348_v44 = vld [vmem:[%s2292_s2 + $0x178] sm:$0xff] }
  0x2d   :  { %1122 = vmatpush1.bf16.msra.mxu0 %v1121_v20  ;;  %v1143_v20 = vpack.c.bf16 %v107_v13, %v105_v11  ;;  %1210 = vmatprep.subr.bf16.mxu1 %v1209_v14  ;;  %v129_v11 = vld [vmem:[%s2290_s1 + $0x2c8] sm:$0xff]  ;;  %v131_v13 = vld [vmem:[%s2290_s1 + $0x2d8] sm:$0xff]  ;;  %v341_v14 = vld [vmem:[%s2292_s2 + $0x140] sm:$0xff] }
  0x2e   :  { %1124 = vmatprep.subr.bf16.mxu0 %v1123_v21  ;;  %v104_v21 = vld [vmem:[%s2290_s1 + $0x200] sm:$0xff]  ;;  %v1167_v17 = vpack.c.bf16 %v131_v13, %v129_v11  ;;  %v134_v28 = vld [vmem:[%s2290_s1 + $0x2f0] sm:$0xff]  ;;  %v561_v9 = vld [vmem:[%s2294_s3 + $0x18] sm:$0xff] }
  0x2f   :  { %v1145_v30 = vpack.c.bf16 %v106_v22, %v104_v21  ;;  %v1230_v21 = vpack.c.bf16 %v342_v15, %v341_v14  ;;  %v135_v22 = vld [vmem:[%s2290_s1 + $0x2f8] sm:$0xff]  ;;  %v347_v43 = vld [vmem:[%s2292_s2 + $0x170] sm:$0xff]  ;;  %v682_v6 = vld [vmem:[%s2293_s4 + $0x20] sm:$0xff] }
  0x30   :  { %1212 = vmatpush3.bf16.msra.mxu1 %v1211_v24  ;;  %v344_v24 = vld [vmem:[%s2292_s2 + $0x158] sm:$0xff]  ;;  %v1239_v50 = vpack.c.bf16 %v348_v44, %v347_v43  ;;  %v562_v14 = vld [vmem:[%s2294_s3 + $0x20] sm:$0xff]  ;;  %v563_v15 = vld [vmem:[%s2294_s3 + $0x28] sm:$0xff] }
  0x31   :  { %1126 = vmatpush1.bf16.msra.mxu0 %v1125_v32  ;;  %v108_v32 = vld [vmem:[%s2290_s1 + $0x220] sm:$0xff]  ;;  %1214 = vmatprep.subr.bf16.mxu1 %v1213_v26  ;;  %v685_v13 = vld [vmem:[%s2293_s4 + $0x38] sm:$0xff]  ;;  %v696_v51 = vld [vmem:[%s2293_s4 + $0x90] sm:$0xff] }
  0x32   :  { %1128 = vmatprep.subr.bf16.mxu0 %v1127_v33  ;;  %v110_v33 = vld [vmem:[%s2290_s1 + $0x230] sm:$0xff]  ;;  %v694_v44 = vld [vmem:[%s2293_s4 + $0x80] sm:$0xff]  ;;  %vm2159_vm6 = vmpackc.low %vm588_vm5, %vm1386_vm2  ;;  %vm785_vm2 = vcmask 408576   ;;  %vm802_vm5 = vcmask 736912  }
  0x33   :  { %v1149_v39 = vpack.c.bf16 %v110_v33, %v108_v32  ;;  %v139_v32 = vld [vmem:[%s2290_s1 + $0x318] sm:$0xff]  ;;  %v345_v33 = vld [vmem:[%s2292_s2 + $0x160] sm:$0xff] }
  0x34   :  { %1216 = vmatpush3.bf16.msra.mxu1 %v1215_v35  ;;  %v1173_v35 = vpack.c.bf16 %v134_v28, %v132_v27  ;;  %v567_v27 = vld [vmem:[%s2294_s3 + $0x48] sm:$0xff] }
  0x35   :  { %1130 = vmatpush1.bf16.msra.mxu0 %v1129_v45  ;;  %v117_v45 = vld [vmem:[%s2290_s1 + $0x268] sm:$0xff]  ;;  %1217 = vmatprep.subr.bf16.mxu1 %v1385_v49 }
  0x36   :  { %1132 = vmatprep.subr.bf16.mxu0 %v1131_v46  ;;  %v1218_v46 = vpack.c.bf16 %v334_v38, %v333_v37  ;;  %v1155_v53 = vpack.c.bf16 %v119_v47, %v117_v45  ;;  %v136_v37 = vld [vmem:[%s2290_s1 + $0x300] sm:$0xff]  ;;  %v138_v38 = vld [vmem:[%s2290_s1 + $0x310] sm:$0xff] }
  0x37   :  { %424 = vmatmul.mubr.f32.vlgmr.msra.gmra.mrb[0].mxu1 %v297_v40  ;;  %v1236_v40 = vpack.c.bf16 %v346_v34, %v345_v33  ;;  %v1177_v45 = vpack.c.bf16 %v138_v38, %v136_v37  ;;  %v140_v47 = vld [vmem:[%s2290_s1 + $0x320] sm:$0xff]  ;;  %v568_v33 = vld [vmem:[%s2294_s3 + $0x50] sm:$0xff]  ;;  %v569_v34 = vld [vmem:[%s2294_s3 + $0x58] sm:$0xff] }
  0x38   :  { %1219 = vmatpush1.bf16.msra.mxu1 %v1218_v46  ;;  %1037 = vmatprep.mubr.msk.f32.mxu1 %vm144_vm0, %v300_v48  ;;  %v142_v48 = vld [vmem:[%s2290_s1 + $0x330] sm:$0x3]  ;;  %v693_v38 = vld [vmem:[%s2293_s4 + $0x78] sm:$0xff] }
  0x39   :  { %1134 = vmatpush1.bf16.msra.mxu0 %v1133_v59  ;;  %v123_v59 = vld [vmem:[%s2290_s1 + $0x298] sm:$0xff]  ;;  %1220 = vmatprep.subr.bf16.mxu1 %v1385_v49  ;;  %v692_v37 = vld [vmem:[%s2293_s4 + $0x70] sm:$0xff] }
  0x3a   :  { %1136 = vmatprep.subr.bf16.mxu0 %v1135_v60  ;;  %v337_v60 = vld [vmem:[%s2292_s2 + $0x120] sm:$0xff]  ;;  %v1159_v63 = vpack.c.bf16 %v123_v59, %v121_v55  ;;  %v351_v59 = vld [vmem:[%s2292_s2 + $0x190] sm:$0xff] }
  0x3b   :  { %v1224_v3 = vpack.c.bf16 %v338_v61, %v337_v60  ;;  %v678_v55 = vld [vmem:[%s2293_s4] sm:$0xff]  ;;  %v352_v60 = vld [vmem:[%s2292_s2 + $0x198] sm:$0x3] }
  0x3c   :  { %1222 = vmatpush1.bf16.msra.mxu1 %v1221_v56  ;;  %v679_v56 = vld [vmem:[%s2293_s4 + $0x8] sm:$0xff] }
  0x3d   :  { %1138 = vmatpush1.bf16.msra.mxu0 %v1137_v7  ;;  %1223 = vmatprep.subr.bf16.mxu1 %v1385_v49  ;;  %v1161_v7 = vpack.c.bf16 %v122_v1, %v120_v0  ;;  %v1289_v61 = vpack.c.bf16 %v679_v56, %v678_v55  ;;  %v681_v0 = vld [vmem:[%s2293_s4 + $0x18] sm:$0xff]  ;;  %v558_v1 = vld [vmem:[%s2294_s3] sm:$0xff] }
  0x3e   :  { %1140 = vmatprep.subr.bf16.mxu0 %v1139_v8  ;;  %v1163_v8 = vpack.c.bf16 %v127_v4, %v125_v2  ;;  %v559_v2 = vld [vmem:[%s2294_s3 + $0x8] sm:$0xff] }
  0x3f   :  { %v1249_v5 = vpack.c.bf16 %v559_v2, %v558_v1 }
  0x40   :  { %1225 = vmatpush1.bf16.msra.mxu1 %v1224_v3  ;;  %v299_v3 = vmul.f32 %v1584_v58, %v1584_v58 }
  0x41   :  { %1142 = vmatpush1.bf16.msra.mxu0 %v1141_v19  ;;  %1226 = vmatprep.subr.bf16.mxu1 %v1385_v49  ;;  %v130_v19 = vld [vmem:[%s2290_s1 + $0x2d0] sm:$0xff] }
  0x42   :  { %1144 = vmatprep.subr.bf16.mxu0 %v1143_v20  ;;  %v133_v20 = vld [vmem:[%s2290_s1 + $0x2e8] sm:$0xff]  ;;  %v1169_v25 = vpack.c.bf16 %v130_v19, %v128_v18  ;;  %v686_v18 = vld [vmem:[%s2293_s4 + $0x40] sm:$0xff] }
  0x43   :  { %v1171_v26 = vpack.c.bf16 %v135_v22, %v133_v20  ;;  %v687_v19 = vld [vmem:[%s2293_s4 + $0x48] sm:$0xff]  ;;  %v564_v20 = vld [vmem:[%s2294_s3 + $0x30] sm:$0xff] }
  0x44   :  { %220 = vmatmul.mubr.f32.vlgmr.msra.gmra.mrb[0].mxu0 %v1783_v29  ;;  %1228 = vmatpush1.bf16.msra.mxu1 %v1227_v12  ;;  %v684_v12 = vld [vmem:[%s2293_s4 + $0x30] sm:$0xff]  ;;  %v1301_v22 = vpack.c.bf16 %v687_v19, %v686_v18  ;;  %v702_v18 = vld [vmem:[%s2293_s4 + $0xc0] sm:$0xff] }
  0x45   :  { %1146 = vmatpush1.bf16.msra.mxu0 %v1145_v30  ;;  %1035 = vmatprep.mubr.msk.f32.mxu0 %vm144_vm0, %v1579_v57  ;;  %v116_v57 = vld [vmem:[%s2290_s1 + $0x260] sm:$0xff]  ;;  %v137_v30 = vld [vmem:[%s2290_s1 + $0x308] sm:$0xff]  ;;  %v580_v19 = vld [vmem:[%s2294_s3 + $0xb0] sm:$0xff]  ;;  %vm810_vm0 = vcmask 900720  }
  0x46   :  { %1148 = vmatprep.subr.bf16.mxu0 %v1147_v31  ;;  %v1157_v62 = vpack.c.bf16 %v118_v54, %v116_v57  ;;  %1229 = vmatprep.subr.bf16.mxu1 %v1385_v49  ;;  %v1233_v31 = vpack.c.bf16 %v344_v24, %v343_v23  ;;  %v1175_v36 = vpack.c.bf16 %v139_v32, %v137_v30  ;;  %v688_v24 = vld [vmem:[%s2293_s4 + $0x50] sm:$0xff]  ;;  %v691_v32 = vld [vmem:[%s2293_s4 + $0x68] sm:$0xff] }
  0x47   :  { %v1182_v57 = vpack.c.bf16 %v142_v48, %v140_v47  ;;  %v573_v47 = vld [vmem:[%s2294_s3 + $0x78] sm:$0xff] }
  0x48   :  { %1231 = vmatpush1.bf16.msra.mxu1 %v1230_v21  ;;  %v565_v21 = vld [vmem:[%s2294_s3 + $0x38] sm:$0xff] }
  0x49   :  { %1150 = vmatpush1.bf16.msra.mxu0 %v1149_v39  ;;  %1232 = vmatprep.subr.bf16.mxu1 %v1385_v49  ;;  %v141_v39 = vld [vmem:[%s2290_s1 + $0x328] sm:$0xff]  ;;  %v1258_v23 = vpack.c.bf16 %v565_v21, %v564_v20  ;;  %v581_v20 = vld [vmem:[%s2294_s3 + $0xb8] sm:$0xff]  ;;  %v1388_v21 = vmov 0.0  }
  0x4a   :  { %1152 = vmatprep.subr.bf16.mxu0 %v1151_v42  ;;  %v143_v42 = vld [vmem:[%s2290_s1 + $0x338] sm:$0x3] }
  0x4b   :  { %v1179_v46 = vpack.c.bf16 %v143_v42, %v141_v39  ;;  %v570_v39 = vld [vmem:[%s2294_s3 + $0x60] sm:$0xff]  ;;  %v1310_v42 = vpack.c.bf16 %v693_v38, %v692_v37 }
  0x4c   :  { %1234 = vmatpush1.bf16.msra.mxu1 %v1233_v31  ;;  %v690_v31 = vld [vmem:[%s2293_s4 + $0x60] sm:$0xff] }
  0x4d   :  { %1154 = vmatpush1.bf16.msra.mxu0 %v1153_v52  ;;  %1235 = vmatprep.subr.bf16.mxu1 %v1385_v49  ;;  %v349_v52 = vld [vmem:[%s2292_s2 + $0x180] sm:$0xff] }
  0x4e   :  { %1156 = vmatprep.subr.bf16.mxu0 %v1155_v53  ;;  %v350_v53 = vld [vmem:[%s2292_s2 + $0x188] sm:$0xff] }
  0x4f   :  { %v1242_v54 = vpack.c.bf16 %v350_v53, %v349_v52  ;;  %v697_v52 = vld [vmem:[%s2293_s4 + $0x98] sm:$0xff]  ;;  %v574_v53 = vld [vmem:[%s2294_s3 + $0x80] sm:$0xff] }
  0x50   :  { %1237 = vmatpush1.bf16.msra.mxu1 %v1236_v40  ;;  %v571_v40 = vld [vmem:[%s2294_s3 + $0x68] sm:$0xff]  ;;  %v1316_v55 = vpack.c.bf16 %v697_v52, %v696_v51 }
  0x51   :  { %1158 = vmatpush1.bf16.msra.mxu0 %v1157_v62  ;;  %1238 = vmatprep.subr.bf16.mxu1 %v1385_v49  ;;  %v1245_v62 = vpack.c.bf16 %v352_v60, %v351_v59  ;;  %v1267_v43 = vpack.c.bf16 %v571_v40, %v570_v39  ;;  %v698_v59 = vld [vmem:[%s2293_s4 + $0xa0] sm:$0xff]  ;;  %v699_v60 = vld [vmem:[%s2293_s4 + $0xa8] sm:$0xff] }
  0x52   :  { %1160 = vmatprep.subr.bf16.mxu0 %v1159_v63  ;;  %v680_v63 = vld [vmem:[%s2293_s4 + $0x10] sm:$0xff] }
  0x53   :  { %v1292_v4 = vpack.c.bf16 %v681_v0, %v680_v63  ;;  %v1319_v63 = vpack.c.bf16 %v699_v60, %v698_v59  ;;  %v805_v59 = vsel %vm804_vm11, %v1783_v29, -inf  ;;  %v817_v60 = vsel %vm816_vm12, %v1783_v29, -inf }
  0x54   :  { %1240 = vmatpush1.bf16.msra.mxu1 %v1239_v50  ;;  %vm835_vm11 = vcmask 777968   ;;  %vm841_vm12 = vcmask 786168  }
  0x55   :  { %1162 = vmatpush1.bf16.msra.mxu0 %v1161_v7  ;;  %1241 = vmatprep.subr.bf16.mxu1 %v1385_v49  ;;  %v683_v7 = vld [vmem:[%s2293_s4 + $0x28] sm:$0xff] }
  0x56   :  { %1164 = vmatprep.subr.bf16.mxu0 %v1163_v8  ;;  %v560_v8 = vld [vmem:[%s2294_s3 + $0x10] sm:$0xff]  ;;  %v1295_v10 = vpack.c.bf16 %v683_v7, %v682_v6 }
  0x57   :  { %v1252_v11 = vpack.c.bf16 %v561_v9, %v560_v8 }
  0x58   :  { %1243 = vmatpush1.bf16.msra.mxu1 %v1242_v54 }
  0x59   :  { %1166 = vmatpush1.bf16.msra.mxu0 %v1165_v16  ;;  %1244 = vmatprep.subr.bf16.mxu1 %v1385_v49  ;;  %v1298_v16 = vpack.c.bf16 %v685_v13, %v684_v12  ;;  %v700_v12 = vld [vmem:[%s2293_s4 + $0xb0] sm:$0xff]  ;;  %v701_v13 = vld [vmem:[%s2293_s4 + $0xb8] sm:$0xff] }
  0x5a   :  { %1168 = vmatprep.subr.bf16.mxu0 %v1167_v17  ;;  %v1255_v17 = vpack.c.bf16 %v563_v15, %v562_v14  ;;  %v1322_v14 = vpack.c.bf16 %v701_v13, %v700_v12  ;;  %v578_v15 = vld [vmem:[%s2294_s3 + $0xa0] sm:$0xff] }
  0x5c   :  { %1247 = vmatpush1.bf16.msk.msra.mxu1 %vm1951_vm3, %v1245_v62  ;;  %v577_v62 = vld [vmem:[%s2294_s3 + $0x98] sm:$0xff] }
  0x5d   :  { %1170 = vmatpush1.bf16.msra.mxu0 %v1169_v25  ;;  %1248 = vmatprep.subr.bf16.mxu1 %v1385_v49  ;;  %v689_v25 = vld [vmem:[%s2293_s4 + $0x58] sm:$0xff] }
  0x5e   :  { %1172 = vmatprep.subr.bf16.mxu0 %v1171_v26  ;;  %v566_v26 = vld [vmem:[%s2294_s3 + $0x40] sm:$0xff]  ;;  %v1304_v28 = vpack.c.bf16 %v689_v25, %v688_v24  ;;  %v583_v24 = vld [vmem:[%s2294_s3 + $0xc8] sm:$0xf] }
  0x5f   :  { %494 = vmatmul.mubr.f32.vlgmr.msra.gmra.mrb[2].mxu1 %v299_v3  ;;  %v1261_v30 = vpack.c.bf16 %v567_v27, %v566_v26  ;;  %v524_v27 = vlaneseq }
  0x60   :  { %1250 = vmatpush1.bf16.msra.mxu1 %v1249_v5 }
  0x61   :  { %1174 = vmatpush1.bf16.msra.mxu0 %v1173_v35  ;;  %1251 = vmatprep.subr.bf16.mxu1 %v1385_v49  ;;  %v1307_v35 = vpack.c.bf16 %v691_v32, %v690_v31  ;;  %v2167_v38 = vshrl.u32 %v524_v27, 7 }
  0x62   :  { %1176 = vmatprep.subr.bf16.mxu0 %v1175_v36  ;;  %v1264_v36 = vpack.c.bf16 %v569_v34, %v568_v33 }
  0x64   :  { %1253 = vmatpush1.bf16.msra.mxu1 %v1252_v11 }
  0x65   :  { %1178 = vmatpush1.bf16.msra.mxu0 %v1177_v45  ;;  %1254 = vmatprep.subr.bf16.mxu1 %v1385_v49  ;;  %v695_v45 = vld [vmem:[%s2293_s4 + $0x88] sm:$0xff] }
  0x66   :  { %1181 = vmatprep.subr.msk.bf16.mxu0 %vm1951_vm3, %v1179_v46  ;;  %v572_v46 = vld [vmem:[%s2294_s3 + $0x70] sm:$0xff]  ;;  %v1313_v48 = vpack.c.bf16 %v695_v45, %v694_v44  ;;  %v662_v44 = vld [vmem:[%s2295_s5] sm:$0x3]  ;;  %v670_v45 = vsub.s32 1, %v2167_v38  ;;  %s1390_s5 = smov 56  }
  0x67   :  { %v1270_v50 = vpack.c.bf16 %v573_v47, %v572_v46 }
  0x68   :  { %1256 = vmatpush1.bf16.msra.mxu1 %v1255_v17  ;;  %v671_v47 = vrot.slane %v662_v44, %v670_v45 }
  0x69   :  { %1184 = vmatpush1.bf16.msk.msra.mxu0 %vm1951_vm3, %v1182_v57  ;;  %1257 = vmatprep.subr.bf16.mxu1 %v1385_v49  ;;  %v575_v57 = vld [vmem:[%s2294_s3 + $0x88] sm:$0xff]  ;;  %vm790_vm3 = vcmask 540048  }
  0x6a   :  { %1288 = vmatprep.subr.bf16.mxu0 %v1385_v49  ;;  %v1273_v56 = vpack.c.bf16 %v575_v57, %v574_v53 }
  0x6c   :  { %291 = vmatmul.mubr.f32.vlgmr.msra.gmra.mrb[0].mxu0 %v1584_v58  ;;  %1259 = vmatpush1.bf16.msra.mxu1 %v1258_v23  ;;  %v582_v23 = vld [vmem:[%s2294_s3 + $0xc0] sm:$0xff] }
  0x6d   :  { %1290 = vmatpush1.bf16.msra.mxu0 %v1289_v61  ;;  %1260 = vmatprep.subr.bf16.mxu1 %v1385_v49  ;;  %v576_v61 = vld [vmem:[%s2294_s3 + $0x90] sm:$0xff]  ;;  %v1285_v26 = vpack.c.bf16 %v583_v24, %v582_v23 }
  0x6e   :  { %1291 = vmatprep.subr.bf16.mxu0 %v1385_v49  ;;  %v1276_v2 = vpack.c.bf16 %v577_v62, %v576_v61  ;;  %v823_v61 = vsel %vm822_vm13, %v1540_v41, -inf  ;;  %v825_v62 = vsel %vm824_vm14, %v1584_v58, -inf  ;;  %v916_v23 = vld [vmem:[%s2298_s7 + $0x10] sm:$0xff] }
  0x70   :  { %1262 = vmatpush1.bf16.msra.mxu1 %v1261_v30 }
  0x71   :  { %1293 = vmatpush1.bf16.msra.mxu0 %v1292_v4  ;;  %1263 = vmatprep.subr.bf16.mxu1 %v1385_v49 }
  0x72   :  { %1294 = vmatprep.subr.bf16.mxu0 %v1385_v49 }
  0x74   :  { %1265 = vmatpush1.bf16.msra.mxu1 %v1264_v36 }
  0x75   :  { %1296 = vmatpush1.bf16.msra.mxu0 %v1295_v10  ;;  %1266 = vmatprep.subr.bf16.mxu1 %v1385_v49 }
  0x76   :  { %1297 = vmatprep.subr.bf16.mxu0 %v1385_v49 }
  0x78   :  { %1268 = vmatpush1.bf16.msra.mxu1 %v1267_v43 }
  0x79   :  { %1299 = vmatpush1.bf16.msra.mxu0 %v1298_v16  ;;  %1269 = vmatprep.subr.bf16.mxu1 %v1385_v49  ;;  %v579_v16 = vld [vmem:[%s2294_s3 + $0xa8] sm:$0xff] }
  0x7a   :  { %1300 = vmatprep.subr.bf16.mxu0 %v1385_v49  ;;  %v1279_v17 = vpack.c.bf16 %v579_v16, %v578_v15 }
  0x7c   :  { %1271 = vmatpush1.bf16.msra.mxu1 %v1270_v50 }
  0x7d   :  { %1302 = vmatpush1.bf16.msra.mxu0 %v1301_v22  ;;  %v512_v54 = vpop.permute.xlu0 %511  ;;  %1272 = vmatprep.subr.bf16.mxu1 %v1385_v49  ;;  %v1282_v22 = vpack.c.bf16 %v581_v20, %v580_v19  ;;  %v899_v20 = vsub.s32 5, %v2167_v38 }
  0x7e   :  { %1303 = vmatprep.subr.bf16.mxu0 %v1385_v49 }
  0x80   :  { %1274 = vmatpush1.bf16.msra.mxu1 %v1273_v56 }
  0x81   :  { %1305 = vmatpush1.bf16.msra.mxu0 %v1304_v28  ;;  %v516_v0 = vpop.permute.xlu1 %515  ;;  %v514_v1 = vpop.permute.xlu0 %513  ;;  %1275 = vmatprep.subr.bf16.mxu1 %v1385_v49  ;;  %v525_v28 = vand.u32 127, %v524_v27  ;;  %v917_v27 = vld [vmem:[%s2298_s7 + $0x18] sm:$0xff] }
  0x82   :  { %1306 = vmatprep.subr.bf16.mxu0 %v1385_v49  ;;  %v518_v3 = vsel %vm517_vm4, %v512_v54, %v514_v1  ;;  %v519_v4 = vsel %vm517_vm4, %v514_v1, %v516_v0  ;;  %v838_v0 = vsel %vm837_vm15, %v1584_v58, -inf  ;;  %v844_v58 = vld [vmem:[%s2296_s8] sm:$0x3f]  ;;  %s1394_s8 = smov 66   ;;  %vm796_vm4 = vcmask 671248  }
  0x83   :  { %v522_v5 = vsub.f32 %v1783_v29, %v518_v3  ;;  %v523_v6 = vsub.f32 %v1540_v41, %v519_v4  ;;  %vm527_vm9 = vcmp.lt.s32.totalorder %v525_v28, 96  ;;  %v811_v3 = vsel %vm810_vm0, %v1540_v41, -inf }
  0x84   :  { %1277 = vmatpush1.bf16.msra.mxu1 %v1276_v2  ;;  %v832_v4 = vsel %vm831_vm1, %v1783_v29, -inf  ;;  %v857_v41 = vrot.slane %v844_v58, %v670_v45  ;;  %v900_v24 = vrot.slane %v844_v58, %v899_v20  ;;  %v1328_v28 = vpack.c.bf16 %v917_v27, %v916_v23 }
  0x85   :  { %1308 = vmatpush1.bf16.msra.mxu0 %v1307_v35  ;;  %v529_v7 = vand.u32 2147483647, %v522_v5  ;;  %v530_v8 = vand.u32 2147483647, %v523_v6  ;;  %v531_v9 = vmul.f32 %v522_v5, %v522_v5  ;;  %1278 = vmatprep.subr.bf16.mxu1 %v1385_v49  ;;  %v532_v11 = vmul.f32 %v523_v6, %v523_v6 }
  0x86   :  { %1309 = vmatprep.subr.bf16.mxu0 %v1385_v49  ;;  %vm876_vm0 = vcmask 1048320   ;;  %vm910_vm1 = vcmask 490608  }
  0x87   :  { %v1377_v10 = vpack.i.bf16 %v530_v8, %v529_v7  ;;  %549 = vrot.lane.b32.xlu0 %v531_v9, %s1387_s22  ;;  %v890_v8 = vsub.s32 4, %v2167_v38  ;;  %v1040_v9 = vld [vmem:[%s2297_s6] ss:$0 sm:$0xff] }
  0x88   :  { %1280 = vmatpush1.bf16.msra.mxu1 %v1279_v17 }
  0x89   :  { %1311 = vmatpush1.bf16.msra.mxu0 %v1310_v42  ;;  %1378 = vrot.lane.b32.xlu1 %v1377_v10, %s1387_s22  ;;  %v666_v42 = vsub.s32 0, %v2167_v38  ;;  %v891_v29 = vrot.slane %v844_v58, %v890_v8 }
  0x8a   :  { %1312 = vmatprep.subr.bf16.mxu0 %v1385_v49  ;;  %1281 = vmatprep.subr.bf16.mxu1 %v1385_v49 }
  0x8b   :  { %v667_v46 = vrot.slane %v662_v44, %v666_v42  ;;  %v848_v7 = vrot.slane %v844_v58, %v666_v42  ;;  %v927_v44 = vld [vmem:[%s2298_s7 + $0x68] sm:$0xff] }
  0x8c   :  { %1283 = vmatpush1.bf16.msra.mxu1 %v1282_v22  ;;  %v915_v22 = vld [vmem:[%s2298_s7 + $0x8] sm:$0xff] }
  0x8d   :  { %1314 = vmatpush1.bf16.msra.mxu0 %v1313_v48  ;;  %551 = vrot.lane.b32.xlu1 %v532_v11, %s1387_s22  ;;  %s1392_s22 = smov 82  }
  0x8e   :  { %1315 = vmatprep.subr.bf16.mxu0 %v1385_v49  ;;  %1284 = vmatprep.subr.bf16.mxu1 %v1385_v49 }
  0x90   :  { %1287 = vmatpush1.bf16.msk.msra.mxu1 %vm2159_vm6, %v1285_v26 }
  0x91   :  { %1317 = vmatpush1.bf16.msra.mxu0 %v1316_v55  ;;  %1324 = vmatprep.subr.bf16.mxu1 %v1385_v49 }
  0x92   :  { %1318 = vmatprep.subr.bf16.mxu0 %v1385_v49 }
  0x95   :  { %1320 = vmatpush1.bf16.msra.mxu0 %v1319_v63  ;;  %v826_v63 = vmax.f32 %v823_v61, %v825_v62 }
  0x96   :  { %1321 = vmatprep.subr.bf16.mxu0 %v1385_v49 }
  0x99   :  { %1323 = vmatpush1.bf16.msra.mxu0 %v1322_v14  ;;  %v881_v14 = vsub.s32 3, %v2167_v38 }
  0x9a   :  { %762 = vmatprep.subr.mxu0 %v1388_v21  ;;  %v914_v21 = vld [vmem:[%s2298_s7] sm:$0xff] }
  0x9b   :  { %v882_v17 = vrot.slane %v844_v58, %v881_v14  ;;  %v1325_v26 = vpack.c.bf16 %v915_v22, %v914_v21  ;;  %v1016_v21 = vstv %s2299_s9 }
  0x9d   :  { %763 = vmatpush1.msra.mxu0 %v702_v18  ;;  %v865_v18 = vsub.s32 2, %v2167_v38 }
  0x9f   :  { %v866_v19 = vrot.slane %v844_v58, %v865_v18  ;;  %v936_v58 = vld [vmem:[%s2298_s7 + $0xb0] sm:$0xff] }
  0xf9   :  { %v550_v33 = vpop.permute.xlu0 %549 }
  0xfb   :  { %v1379_v30 = vpop.permute.xlu1 %1378 }
  0xfc   :  { %v1381_v31 = vunpack.i.h.bf16 %v1379_v30  ;;  %v1380_v32 = vunpack.i.l.bf16 %v1379_v30  ;;  %v918_v30 = vld [vmem:[%s2298_s7 + $0x20] sm:$0xff] }
  0xfe   :  { %v544_v34 = vsel %vm543_vm7, %v1380_v32, %v1381_v31  ;;  %v919_v31 = vld [vmem:[%s2298_s7 + $0x28] sm:$0xff] }
  0xff   :  { %v552_v35 = vpop.permute.xlu1 %551  ;;  %v1331_v32 = vpack.c.bf16 %v919_v31, %v918_v30 }
 0x100   :  { %v553_v36 = vsel %vm543_vm7, %v550_v33, %v552_v35  ;;  %1039 = vmatprep.mubr.msk.f32.mxu1 %vm584_vm8, %v552_v35  ;;  %v920_v33 = vld [vmem:[%s2298_s7 + $0x30] sm:$0xff]  ;;  %vm808_vm7 = vcmask 745168   ;;  %vm814_vm8 = vcmask 753368  }
 0x101   :  { %v556_v37 = vsel %vm527_vm9, %v544_v34, %v553_v36  ;;  %v921_v34 = vld [vmem:[%s2298_s7 + $0x38] sm:$0xff]  ;;  %v922_v36 = vld [vmem:[%s2298_s7 + $0x40] sm:$0xff]  ;;  %vm820_vm9 = vcmask 761568  }
 0x102   :  { %657 = vmatmul.mubr.f32.vlgmr.msra.gmra.mrb[4].mxu1 %v556_v37  ;;  %v1334_v35 = vpack.c.bf16 %v921_v34, %v920_v33  ;;  %v923_v37 = vld [vmem:[%s2298_s7 + $0x48] sm:$0xff] }
 0x103   :  { %1326 = vmatpush1.bf16.msra.mxu1 %v1325_v26  ;;  %v1337_v38 = vpack.c.bf16 %v923_v37, %v922_v36 }
 0x104   :  { %1327 = vmatprep.subr.bf16.mxu1 %v1385_v49 }
 0x107   :  { %1329 = vmatpush1.bf16.msra.mxu1 %v1328_v28 }
 0x108   :  { %1330 = vmatprep.subr.bf16.mxu1 %v1385_v49 }
 0x10a   :  { %v1076_v39 = vpop.f32.mrb[0].mxu1 }
 0x10b   :  { %v1077_v40 = vpop.f32.mrb[1].mxu1  ;;  %1332 = vmatpush1.bf16.msra.mxu1 %v1331_v32 }
 0x10c   :  { %v1078_v43 = vadd.f32 %v1077_v40, %v1076_v39  ;;  %1333 = vmatprep.subr.bf16.mxu1 %v1385_v49  ;;  %v924_v39 = vld [vmem:[%s2298_s7 + $0x50] sm:$0xff]  ;;  %v925_v40 = vld [vmem:[%s2298_s7 + $0x58] sm:$0xff] }
 0x10d   :  { %v1340_v42 = vpack.c.bf16 %v925_v40, %v924_v39 }
 0x10f   :  { %1335 = vmatpush1.bf16.msra.mxu1 %v1334_v35 }
 0x110   :  { %1336 = vmatprep.subr.bf16.mxu1 %v1385_v49 }
 0x113   :  { %1338 = vmatpush1.bf16.msra.mxu1 %v1337_v38 }
 0x114   :  { %1339 = vmatprep.subr.bf16.mxu1 %v1385_v49 }
 0x117   :  { %1341 = vmatpush1.bf16.msra.mxu1 %v1340_v42 }
 0x118   :  { %1342 = vmatprep.subr.bf16.mxu1 %v1385_v49 }
 0x132   :  { %v495_v54 = vpop.f32.mrb[2].mxu1 }
 0x133   :  { %v496_v55 = vadd.f32 %v1078_v43, %v495_v54  ;;  %v497_v56 = vpop.f32.mrb[3].mxu1  ;;  %v926_v43 = vld [vmem:[%s2298_s7 + $0x60] sm:$0xff] }
 0x134   :  { %v1343_v45 = vpack.c.bf16 %v927_v44, %v926_v43 }
 0x136   :  { %1344 = vmatpush1.bf16.msra.mxu1 %v1343_v45 }
 0x137   :  { %1345 = vmatprep.subr.bf16.mxu1 %v1385_v49 }
 0x13f   :  { %v292_v48 = vpop.f32.mrb[0].mxu0 }
 0x140   :  { %v674_v50 = vadd.f32 %v667_v46, %v292_v48  ;;  %v294_v51 = vpop.f32.mrb[1].mxu0  ;;  %v928_v46 = vld [vmem:[%s2298_s7 + $0x70] sm:$0xff] }
 0x141   :  { %v675_v52 = vadd.f32 %v671_v47, %v294_v51  ;;  %500 = vrot.lane.b32.xlu0 %v294_v51, %s1389_s18  ;;  %v929_v47 = vld [vmem:[%s2298_s7 + $0x78] sm:$0xff] }
 0x142   :  { %v676_v57 = vmax.f32 %v674_v50, 0.0  ;;  %v1346_v48 = vpack.c.bf16 %v929_v47, %v928_v46  ;;  %v930_v50 = vld [vmem:[%s2298_s7 + $0x80] sm:$0xff] }
 0x143   :  { %v677_v53 = vmax.f32 %v675_v52, 0.0 }
 0x144   :  { %1347 = vmatpush1.bf16.msra.mxu1 %v1346_v48 }
 0x145   :  { %1041 = vmatprep.mubr.msk.f32.mxu0 %vm710_vm10, %v677_v53  ;;  %1348 = vmatprep.subr.bf16.mxu1 %v1385_v49  ;;  %v932_v53 = vld [vmem:[%s2298_s7 + $0x90] sm:$0xff]  ;;  %vm829_vm10 = vcmask 769768  }
 0x146   :  { %779 = vmatmul.mubr.f32.vlgmr.msra.gmra.mrb[2].mxu0 %v676_v57  ;;  %v933_v57 = vld [vmem:[%s2298_s7 + $0x98] sm:$0xff] }
 0x147   :  { %v1352_v54 = vpack.c.bf16 %v933_v57, %v932_v53 }
 0x160   :  { %806 = vmax.xlane.f32.xlu0 %v805_v59 }
 0x164   :  { %818 = vmax.xlane.f32.xlu0 %v817_v60 }
 0x168   :  { %827 = vmax.xlane.f32.xlu0 %v826_v63 }
 0x16c   :  { %839 = vmax.xlane.f32.xlu0 %v838_v0 }
 0x1b3   :  { %v501_v1 = vpop.permute.xlu0 %500 }
 0x1b4   :  { %v503_v2 = vmul.f32 %v501_v1, %v294_v51 }
 0x1b6   :  { %505 = vrot.lane.b32.xlu1 %v503_v2, %s1390_s5 }
 0x1d5   :  { %v658_v5 = vpop.f32.mrb[4].mxu1 }
 0x1d6   :  { %v660_v6 = vpop.f32.mrb[5].mxu1 }
 0x1da   :  { %812 = vmax.xlane.f32.xlu1 %v811_v3 }
 0x1de   :  { %833 = vmax.xlane.f32.xlu1 %v832_v4  ;;  %v934_v4 = vld [vmem:[%s2298_s7 + $0xa0] sm:$0xff] }
 0x1ed   :  { %v807_v60 = vpop.xlane.xlu0 %806 }
 0x1ef   :  { %787 = vrot.lane.b32.xlu1 %v294_v51, %s1391_s19  ;;  %v931_v51 = vld [vmem:[%s2298_s7 + $0x88] sm:$0xff]  ;;  %s1395_s19 = smov 92  }
 0x1f0   :  { %v1349_v52 = vpack.c.bf16 %v931_v51, %v930_v50 }
 0x1f1   :  { %v819_v61 = vpop.xlane.xlu0 %818 }
 0x1f2   :  { %1350 = vmatpush1.bf16.msra.mxu1 %v1349_v52 }
 0x1f3   :  { %799 = vrot.lane.b32.xlu1 %v658_v5, %s1392_s22  ;;  %1351 = vmatprep.subr.bf16.mxu1 %v1385_v49  ;;  %v935_v5 = vld [vmem:[%s2298_s7 + $0xa8] sm:$0xff] }
 0x1f4   :  { %v1355_v6 = vpack.c.bf16 %v935_v5, %v934_v4 }
 0x1f5   :  { %v828_v62 = vpop.xlane.xlu0 %827 }
 0x1f6   :  { %1353 = vmatpush1.bf16.msra.mxu1 %v1352_v54 }
 0x1f7   :  { %850 = vrot.lane.b32.xlu1 %v848_v7, %s1393_s23  ;;  %1354 = vmatprep.subr.bf16.mxu1 %v1385_v49  ;;  %v937_v7 = vld [vmem:[%s2298_s7 + $0xb8] sm:$0xf]  ;;  %s1396_s7 = smov 46  }
 0x1f9   :  { %v840_v63 = vpop.xlane.xlu0 %839 }
 0x1fa   :  { %1356 = vmatpush1.bf16.msra.mxu1 %v1355_v6 }
 0x1fb   :  { %859 = vrot.lane.b32.xlu1 %v857_v41, %s1393_s23  ;;  %1357 = vmatprep.subr.bf16.mxu1 %v1385_v49 }
 0x1ff   :  { %893 = vrot.lane.b32.xlu1 %v891_v29, %s1393_s23  ;;  %v1358_v29 = vpack.c.bf16 %v937_v7, %v936_v58 }
 0x201   :  { %1360 = vmatpush1.bf16.msk.msra.mxu1 %vm2159_vm6, %v1358_v29  ;;  %vm938_vm6 = vcmask 490496  }
 0x219   :  { %v780_v10 = vpop.f32.mrb[2].mxu0 }
 0x21a   :  { %v781_v11 = vadd.f32 %v1040_v9, %v780_v10  ;;  %v782_v12 = vpop.f32.mrb[3].mxu0 }
 0x21c   :  { %v784_v13 = vmax.f32 %v781_v11, 0.0 }
 0x21e   :  { %786 = vst.msk [vmem:[#allocation2] sm:$0xff] %vm785_vm2, %v784_v13 }
 0x228   :  { %v506_v15 = vpop.permute.xlu1 %505 }
 0x229   :  { %v508_v16 = vsub.f32 %v496_v55, %v506_v15 }
 0x22b   :  { %793 = vrot.lane.b32.xlu0 %v508_v16, %s1394_s8 }
 0x22f   :  { %884 = vrot.lane.b32.xlu0 %v882_v17, %s1393_s23 }
 0x233   :  { %868 = vrot.lane.b32.xlu0 %v866_v19, %s1393_s23 }
 0x237   :  { %902 = vrot.lane.b32.xlu0 %v900_v24, %s1393_s23 }
 0x267   :  { %v813_v55 = vpop.xlane.xlu1 %812 }
 0x26b   :  { %v834_v56 = vpop.xlane.xlu1 %833 }
 0x26f   :  { %v788_v59 = vpop.permute.xlu1 %787 }
 0x270   :  { %791 = vst.msk [vmem:[#allocation2] sm:$0xff] %vm790_vm3, %v788_v59 }
 0x273   :  { %v800_v0 = vpop.permute.xlu1 %799 }
 0x277   :  { %v851_v2 = vpop.permute.xlu1 %850 }
 0x27b   :  { %v860_v41 = vpop.permute.xlu1 %859 }
 0x27f   :  { %v894_v10 = vpop.permute.xlu1 %893 }
 0x29d   :  { %v794_v1 = vpop.permute.xlu0 %793 }
 0x29e   :  { %797 = vst.msk [vmem:[#allocation2] sm:$0xff] %vm796_vm4, %v794_v1 }
 0x29f   :  { %803 = vst.msk [vmem:[#allocation2] sm:$0xff] %vm802_vm5, %v800_v0 }
 0x2a0   :  { %809 = vst.msk [vmem:[#allocation2] sm:$0xff] %vm808_vm7, %v807_v60 }
 0x2a1   :  { %815 = vst.msk [vmem:[#allocation2] sm:$0xff] %vm814_vm8, %v813_v55  ;;  %v885_v3 = vpop.permute.xlu0 %884 }
 0x2a2   :  { %821 = vst.msk [vmem:[#allocation2] sm:$0xff] %vm820_vm9, %v819_v61 }
 0x2a3   :  { %830 = vst.msk [vmem:[#allocation2] sm:$0xff] %vm829_vm10, %v828_v62 }
 0x2a4   :  { %836 = vst.msk [vmem:[#allocation2] sm:$0xff] %vm835_vm11, %v834_v56 }
 0x2a5   :  { %842 = vst.msk [vmem:[#allocation2] sm:$0xff] %vm841_vm12, %v840_v63  ;;  %v869_v8 = vpop.permute.xlu0 %868 }
 0x2a9   :  { %v903_v13 = vpop.permute.xlu0 %902 }
 0x2ac   :  { %v843_v9 = vld [vmem:[#allocation2] sm:$0xff] }
 0x2ad   :  { %v853_v11 = vmul.f32 %v851_v2, %v843_v9  ;;  %v887_v12 = vmul.f32 %v885_v3, %v843_v9 }
 0x2af   :  { %vm862_vm13 = vcmp.gt.f32.partialorder %v853_v11, %v860_v41  ;;  %vm896_vm15 = vcmp.gt.f32.partialorder %v887_v12, %v894_v10 }
 0x2b0   :  { %v871_v14 = vsel %vm862_vm13, %v869_v8, 0.0  ;;  %v905_v15 = vsel %vm896_vm15, %v903_v13, 0.0 }
 0x2b1   :  { %907 = vrot.lane.b32.xlu0 %v905_v15, %s1395_s19  ;;  %873 = vrot.lane.b32.xlu1 %v871_v14, %s1396_s7 }
 0x323   :  { %v908_v16 = vpop.permute.xlu0 %907  ;;  %v874_v49 = vpop.permute.xlu1 %873 }
 0x324   :  { %877 = vst.msk [vmem:[#allocation2] sm:$0xff] %vm876_vm0, %v874_v49 }
 0x325   :  { %878 = vst.msk [vmem:[#allocation2 + $0x8] sm:$0xff] %vm824_vm14, %v874_v49  ;;  %vm1027_vm14 = vcmask 7168  }
 0x326   :  { %911 = vst.msk [vmem:[#allocation2 + $0x8] sm:$0xff] %vm910_vm1, %v908_v16 }
 0x32b   :  { %v912_v17 = vld [vmem:[#allocation2] sm:$0xff] }
 0x32d   :  { %v913_v25 = vld [vmem:[#allocation2 + $0x8] sm:$0xff] }
 0x32e   :  { %1043 = vmatprep.mubr.msk.f32.mxu1 %vm938_vm6, %v913_v25 }
 0x32f   :  { %1010 = vmatmul.mubr.f32.vlgmr.msra.gmra.mrb[6].mxu1 %v912_v17 }
 0x402   :  { %v1011_v18 = vpop.f32.mrb[6].mxu1 }
 0x403   :  { %v1019_v19 = vmul.f32 0.5, %v1011_v18  ;;  %v1013_v20 = vpop.f32.mrb[7].mxu1  ;;  %v1017_v22 = vadd.f32 %v1016_v21, %v1011_v18 }
 0x405   :  { %1021 = vrot.lane.b32.xlu1 %v1019_v19, %s1397_s20  ;;  %v1018_v23 = vmul.f32 0.5, %v1017_v22 }
 0x477   :  { %v1022_v24 = vpop.permute.xlu1 %1021 }
 0x478   :  { %v1024_v26 = vsub.f32 %v1018_v23, %v1022_v24 }
 0x47a   :  { %v1025_v27 = vmul.f32 1.442695, %v1024_v26 }
 0x47c   :  { %1382 = vpow2.f32 %v1025_v27 }
 0x486   :  { %v1383_v28 = vpop.eup %1382 }
 0x487   :  { %1028 = vst.msk [vmem:[%s2300_s10] sm:$0xff] %vm1027_vm14, %v1383_v28 }

</bundles_post_ra>
